<compile_context>
chip_gen: v6e
topology: v6e:2x2x1
jax: 0.10.0
libtpu: 0.0.40
codegen_flags: <defaults>
</compile_context>

<pallas_src>
import functools
import math

import jax
import jax.numpy as jnp
from jax.experimental import pallas as pl
from jax.experimental.pallas import tpu as pltpu


def encoder_kernel(x_ref, mask_ref,
                   wq_ref, wk_ref, wv_ref, wo_ref,
                   g1_ref, b1_ref,
                   w1_ref, w2_ref,
                   g2_ref, b2_ref,
                   y_ref, attn_ref,
                   *, num_heads, d_k, d_v):
    BT, S, D = x_ref.shape
    H = num_heads
    eps = 1e-5
    l = pl.program_id(1)

    # Layer 0 seeds the resident carry (y_ref block is constant across the
    # layer axis, so it holds x_{l} in VMEM between grid steps).
    @pl.when(l == 0)
    def _():
        y_ref[...] = x_ref[...]

    # Merge batch-tile rows so projections / FFN see one dense (BT*S, D) tile.
    x2 = y_ref[...].reshape(BT * S, D)

    wq = wq_ref[0]                      # (D, H*d_k)
    wk = wk_ref[0]
    wv = wv_ref[0]
    wo3 = wo_ref[0]                     # (H, d_v, D)
    g1 = g1_ref[0, 0]; b1 = b1_ref[0, 0]
    g2 = g2_ref[0, 0]; b2 = b2_ref[0, 0]
    w1 = w1_ref[0]                      # (D, d_ff)
    w2 = w2_ref[0]                      # (d_ff, D)

    # Q/K/V projections as dense matmuls; fold 1/sqrt(d_k) into Q once.
    scale = jnp.float32(1.0 / math.sqrt(d_k))
    q2 = jnp.dot(x2, wq, preferred_element_type=jnp.float32) * scale
    k2 = jnp.dot(x2, wk, preferred_element_type=jnp.float32)
    v2 = jnp.dot(x2, wv, preferred_element_type=jnp.float32)

    outs = []
    for b in range(BT):                 # static unroll; BT is small (default 1)
        r0 = b * S
        # Head-major stacks (H, S, d) -> attention runs as head-batched
        # contractions (no per-head matmul loop, no lane concatenate).
        qh = jnp.stack([q2[r0:r0 + S, h * d_k:(h + 1) * d_k] for h in range(H)], axis=0)
        kh = jnp.stack([k2[r0:r0 + S, h * d_k:(h + 1) * d_k] for h in range(H)], axis=0)
        vh = jnp.stack([v2[r0:r0 + S, h * d_v:(h + 1) * d_v] for h in range(H)], axis=0)

        scores = jnp.einsum('hqc,hkc->hqk', qh, kh,
                            preferred_element_type=jnp.float32)       # (H,S,S)
        # key-padding mask (1, S) broadcast over heads & query rows
        maskb = mask_ref[b] > 0.5                                     # (1, S)
        scores = jnp.where(maskb[None, :, :], jnp.float32(-1e9), scores)

        # head-batched stable softmax; reciprocal runs on the EUP slot
        m = jnp.max(scores, axis=-1, keepdims=True)
        e = jnp.exp(scores - m)
        denom = jnp.sum(e, axis=-1, keepdims=True)
        attn = e * pl.reciprocal(denom, approx=True)                  # (H,S,S)
        attn_ref[0, b] = attn                                         # one slab store

        ctx = jnp.einsum('hqk,hkv->hqv', attn, vh,
                         preferred_element_type=jnp.float32)          # (H,S,dv)
        # output projection accumulated over heads (no concatenate)
        out_h = jnp.einsum('hqv,hvd->hqd', ctx, wo3,
                           preferred_element_type=jnp.float32)        # (H,S,D)
        outs.append(jnp.sum(out_h, axis=0))                           # (S,D)

    out2 = outs[0] if BT == 1 else jnp.concatenate(outs, axis=0)      # (BT*S, D)

    # LayerNorm(attn_out + residual): single-pass variance, rsqrt on the EUP.
    h1 = out2 + x2
    mu1 = jnp.mean(h1, axis=-1, keepdims=True)
    var1 = jnp.mean(h1 * h1, axis=-1, keepdims=True) - mu1 * mu1
    h1n = (h1 - mu1) * jax.lax.rsqrt(var1 + eps) * g1 + b1

    # Position-wise FFN on merged rows.
    ff = jnp.maximum(
        jnp.dot(h1n, w1, preferred_element_type=jnp.float32), 0.0)
    ff = jnp.dot(ff, w2, preferred_element_type=jnp.float32)

    h2 = ff + h1n
    mu2 = jnp.mean(h2, axis=-1, keepdims=True)
    var2 = jnp.mean(h2 * h2, axis=-1, keepdims=True) - mu2 * mu2
    y2 = (h2 - mu2) * jax.lax.rsqrt(var2 + eps) * g2 + b2

    # Write the carry; HBM writeback only happens when the batch window
    # changes, i.e. after the last layer for this batch tile.
    y_ref[...] = y2.reshape(BT, S, D)


def init_encoder_params(key, num_layers, d_model, d_k, d_v, d_ff, num_heads):
    params = []
    for l in range(num_layers):
        ks = jax.random.split(jax.random.fold_in(key, l), 6)
        s = 0.05
        params.append(dict(
            wq=(jax.random.normal(ks[0], (d_model, num_heads * d_k)) * s).astype(jnp.float32),
            wk=(jax.random.normal(ks[1], (d_model, num_heads * d_k)) * s).astype(jnp.float32),
            wv=(jax.random.normal(ks[2], (d_model, num_heads * d_v)) * s).astype(jnp.float32),
            wo=(jax.random.normal(ks[3], (num_heads * d_v, d_model)) * s).astype(jnp.float32),
            g1=jnp.ones((1, d_model), jnp.float32),
            b1=jnp.zeros((1, d_model), jnp.float32),
            w1=(jax.random.normal(ks[4], (d_model, d_ff)) * s).astype(jnp.float32),
            w2=(jax.random.normal(ks[5], (d_ff, d_model)) * s).astype(jnp.float32),
            g2=jnp.ones((1, d_model), jnp.float32),
            b2=jnp.zeros((1, d_model), jnp.float32),
        ))
    return params


def encoder_forward(x, params, *, num_heads, d_k, d_v, bt=1):
    B, S, D = x.shape
    L = len(params)
    d_ff = params[0]["w1"].shape[1]
    assert B % bt == 0

    # attention padding mask from the original embedded input: key position j
    # is masked if its embedding is all zeros.  Passed compactly as (B, 1, S);
    # broadcast to (H, S, S) inside the kernel.
    pad = jnp.all(x == 0, axis=-1)                      # (B, S)
    mask = pad[:, None, :].astype(jnp.float32)          # (B, 1, S)

    # Stack per-layer weights along a leading L axis so the layer grid axis
    # can index them (pipelined weight prefetch across layers).
    stk = lambda k: jnp.stack([p[k] for p in params], axis=0)
    wq, wk, wv = stk("wq"), stk("wk"), stk("wv")
    wo = stk("wo").reshape(L, num_heads, d_v, D)        # (L, H, d_v, D)
    g1, b1 = stk("g1"), stk("b1")
    w1, w2 = stk("w1"), stk("w2")
    g2, b2 = stk("g2"), stk("b2")

    kernel = functools.partial(encoder_kernel,
                               num_heads=num_heads, d_k=d_k, d_v=d_v)

    bsel = lambda b, l: (b, 0, 0)        # per-batch-tile blocks (constant in l)
    wsel = lambda b, l: (l, 0, 0)        # per-layer weight blocks
    wsel4 = lambda b, l: (l, 0, 0, 0)

    # TODO(synk): at production sizes use bf16 matmul inputs (v6e/v7x), make
    # D / H*d_k / d_ff multiples of 128 for lane-dense stores, and tile d_ff
    # with an extra "arbitrary" grid axis to bound VMEM on v7x (64 MiB).
    y, attn = pl.pallas_call(
        kernel,
        out_shape=(jax.ShapeDtypeStruct((B, S, D), jnp.float32),
                   jax.ShapeDtypeStruct((L, B, num_heads, S, S), jnp.float32)),
        grid=(B // bt, L),
        in_specs=[
            pl.BlockSpec((bt, S, D), bsel),                         # x (seed)
            pl.BlockSpec((bt, 1, S), bsel),                         # compact mask
            pl.BlockSpec((1, D, num_heads * d_k), wsel),            # wq[l]
            pl.BlockSpec((1, D, num_heads * d_k), wsel),            # wk[l]
            pl.BlockSpec((1, D, num_heads * d_v), wsel),            # wv[l]
            pl.BlockSpec((1, num_heads, d_v, D), wsel4),            # wo[l]
            pl.BlockSpec((1, 1, D), wsel),                          # ln1 gamma
            pl.BlockSpec((1, 1, D), wsel),                          # ln1 beta
            pl.BlockSpec((1, D, d_ff), wsel),                       # ffn w1
            pl.BlockSpec((1, d_ff, D), wsel),                       # ffn w2
            pl.BlockSpec((1, 1, D), wsel),                          # ln2 gamma
            pl.BlockSpec((1, 1, D), wsel),                          # ln2 beta
        ],
        out_specs=(pl.BlockSpec((bt, S, D), bsel),                  # layer carry / final y
                   pl.BlockSpec((1, bt, num_heads, S, S),
                                lambda b, l: (l, b, 0, 0, 0))),     # per-layer attn
        compiler_params=pltpu.CompilerParams(
            dimension_semantics=("parallel", "arbitrary")),
    )(x, mask, wq, wk, wv, wo, g1, b1, w1, w2, g2, b2)

    attn_list = [attn[l] for l in range(L)]
    return y, attn_list


if __name__ == "__main__":
    num_layers, d_model, d_k, d_v, d_ff, num_heads = 2, 32, 8, 8, 64, 4
    B, S = 2, 8

    key = jax.random.PRNGKey(0)
    kx, kp = jax.random.split(key)
    x = jax.random.normal(kx, (B, S, d_model), dtype=jnp.float32)
    # make one key position a genuine pad (all-zero embedding) to exercise the mask
    x = x.at[0, S - 1, :].set(0.0)

    params = init_encoder_params(kp, num_layers, d_model, d_k, d_v, d_ff, num_heads)

    y, attn_list = encoder_forward(x, params, num_heads=num_heads, d_k=d_k, d_v=d_v)
    y = jax.block_until_ready(y)
    for a in attn_list:
        jax.block_until_ready(a)

    assert y.shape == (B, S, d_model)
    assert len(attn_list) == num_layers
    assert attn_list[0].shape == (B, num_heads, S, S)
    print("KERNEL_OK")
</pallas_src>

<mosaic_0001>
module attributes {stable_mosaic.version = 11 : i64} {
  func.func @encoder_kernel(%arg0: i32, %arg1: i32, %arg2: memref<1x8x32xf32, #tpu.memory_space<vmem>>, %arg3: memref<1x1x8xf32, #tpu.memory_space<vmem>>, %arg4: memref<1x32x32xf32, #tpu.memory_space<vmem>>, %arg5: memref<1x32x32xf32, #tpu.memory_space<vmem>>, %arg6: memref<1x32x32xf32, #tpu.memory_space<vmem>>, %arg7: memref<1x4x8x32xf32, #tpu.memory_space<vmem>>, %arg8: memref<1x1x32xf32, #tpu.memory_space<vmem>>, %arg9: memref<1x1x32xf32, #tpu.memory_space<vmem>>, %arg10: memref<1x32x64xf32, #tpu.memory_space<vmem>>, %arg11: memref<1x64x32xf32, #tpu.memory_space<vmem>>, %arg12: memref<1x1x32xf32, #tpu.memory_space<vmem>>, %arg13: memref<1x1x32xf32, #tpu.memory_space<vmem>>, %arg14: memref<1x8x32xf32, #tpu.memory_space<vmem>>, %arg15: memref<1x1x4x8x8xf32, #tpu.memory_space<vmem>>) attributes {dimension_semantics = [#tpu.dimension_semantics<parallel>, #tpu.dimension_semantics<arbitrary>], iteration_bounds = array<i64: 2, 2>, scalar_prefetch = 0 : i64, scratch_operands = 0 : i64, tpu.core_type = #tpu.core_type<tc>, window_params = [{transform_indices = @transform_0, window_bounds = array<i64: 1, 8, 32>}, {transform_indices = @transform_1, window_bounds = array<i64: 1, 1, 8>}, {transform_indices = @transform_2, window_bounds = array<i64: 1, 32, 32>}, {transform_indices = @transform_3, window_bounds = array<i64: 1, 32, 32>}, {transform_indices = @transform_4, window_bounds = array<i64: 1, 32, 32>}, {transform_indices = @transform_5, window_bounds = array<i64: 1, 4, 8, 32>}, {transform_indices = @transform_6, window_bounds = array<i64: 1, 1, 32>}, {transform_indices = @transform_7, window_bounds = array<i64: 1, 1, 32>}, {transform_indices = @transform_8, window_bounds = array<i64: 1, 32, 64>}, {transform_indices = @transform_9, window_bounds = array<i64: 1, 64, 32>}, {transform_indices = @transform_10, window_bounds = array<i64: 1, 1, 32>}, {transform_indices = @transform_11, window_bounds = array<i64: 1, 1, 32>}, {transform_indices = @transform_12, window_bounds = array<i64: 1, 8, 32>}, {transform_indices = @transform_13, window_bounds = array<i64: 1, 1, 4, 8, 8>}]} {
    %c0_i32 = arith.constant 0 : i32
    %0 = arith.cmpi eq, %arg1, %c0_i32 : i32
    %1 = arith.extui %0 : i1 to i32
    %c0_i32_0 = arith.constant 0 : i32
    %2 = arith.cmpi ne, %1, %c0_i32_0 : i32
    scf.if %2 {
      %c0_69 = arith.constant 0 : index
      %c0_70 = arith.constant 0 : index
      %c0_71 = arith.constant 0 : index
      %139 = vector.load %arg2[%c0_69, %c0_70, %c0_71] : memref<1x8x32xf32, #tpu.memory_space<vmem>>, vector<1x8x32xf32>
      %c0_72 = arith.constant 0 : index
      %c0_73 = arith.constant 0 : index
      %c0_74 = arith.constant 0 : index
      %140 = vector.load %arg14[%c0_72, %c0_73, %c0_74] : memref<1x8x32xf32, #tpu.memory_space<vmem>>, vector<1x8x32xf32>
      tpu.vector_store %arg14[%c0_72, %c0_73, %c0_74], %139 {strides = array<i32>} : memref<1x8x32xf32, #tpu.memory_space<vmem>>, vector<1x8x32xf32>,
    } else {
    }
    %c0 = arith.constant 0 : index
    %c0_1 = arith.constant 0 : index
    %c0_2 = arith.constant 0 : index
    %3 = vector.load %arg14[%c0, %c0_1, %c0_2] : memref<1x8x32xf32, #tpu.memory_space<vmem>>, vector<1x8x32xf32>
    %4 = vector.shape_cast %3 : vector<1x8x32xf32> to vector<8x32xf32>
    %c0_3 = arith.constant 0 : index
    %c0_4 = arith.constant 0 : index
    %c0_5 = arith.constant 0 : index
    %5 = vector.load %arg4[%c0_3, %c0_4, %c0_5] : memref<1x32x32xf32, #tpu.memory_space<vmem>>, vector<1x32x32xf32>
    %6 = vector.shape_cast %5 : vector<1x32x32xf32> to vector<32x32xf32>
    %c0_6 = arith.constant 0 : index
    %c0_7 = arith.constant 0 : index
    %c0_8 = arith.constant 0 : index
    %7 = vector.load %arg5[%c0_6, %c0_7, %c0_8] : memref<1x32x32xf32, #tpu.memory_space<vmem>>, vector<1x32x32xf32>
    %8 = vector.shape_cast %7 : vector<1x32x32xf32> to vector<32x32xf32>
    %c0_9 = arith.constant 0 : index
    %c0_10 = arith.constant 0 : index
    %c0_11 = arith.constant 0 : index
    %9 = vector.load %arg6[%c0_9, %c0_10, %c0_11] : memref<1x32x32xf32, #tpu.memory_space<vmem>>, vector<1x32x32xf32>
    %10 = vector.shape_cast %9 : vector<1x32x32xf32> to vector<32x32xf32>
    %c0_12 = arith.constant 0 : index
    %c0_13 = arith.constant 0 : index
    %c0_14 = arith.constant 0 : index
    %c0_15 = arith.constant 0 : index
    %11 = vector.load %arg7[%c0_12, %c0_13, %c0_14, %c0_15] : memref<1x4x8x32xf32, #tpu.memory_space<vmem>>, vector<1x4x8x32xf32>
    %12 = vector.shape_cast %11 : vector<1x4x8x32xf32> to vector<4x8x32xf32>
    %c0_16 = arith.constant 0 : index
    %c0_17 = arith.constant 0 : index
    %c0_18 = arith.constant 0 : index
    %13 = vector.load %arg8[%c0_16, %c0_17, %c0_18] : memref<1x1x32xf32, #tpu.memory_space<vmem>>, vector<1x1x32xf32>
    %14 = vector.shape_cast %13 : vector<1x1x32xf32> to vector<32xf32>
    %c0_19 = arith.constant 0 : index
    %c0_20 = arith.constant 0 : index
    %c0_21 = arith.constant 0 : index
    %15 = vector.load %arg9[%c0_19, %c0_20, %c0_21] : memref<1x1x32xf32, #tpu.memory_space<vmem>>, vector<1x1x32xf32>
    %16 = vector.shape_cast %15 : vector<1x1x32xf32> to vector<32xf32>
    %c0_22 = arith.constant 0 : index
    %c0_23 = arith.constant 0 : index
    %c0_24 = arith.constant 0 : index
    %17 = vector.load %arg12[%c0_22, %c0_23, %c0_24] : memref<1x1x32xf32, #tpu.memory_space<vmem>>, vector<1x1x32xf32>
    %18 = vector.shape_cast %17 : vector<1x1x32xf32> to vector<32xf32>
    %c0_25 = arith.constant 0 : index
    %c0_26 = arith.constant 0 : index
    %c0_27 = arith.constant 0 : index
    %19 = vector.load %arg13[%c0_25, %c0_26, %c0_27] : memref<1x1x32xf32, #tpu.memory_space<vmem>>, vector<1x1x32xf32>
    %20 = vector.shape_cast %19 : vector<1x1x32xf32> to vector<32xf32>
    %c0_28 = arith.constant 0 : index
    %c0_29 = arith.constant 0 : index
    %c0_30 = arith.constant 0 : index
    %21 = vector.load %arg10[%c0_28, %c0_29, %c0_30] : memref<1x32x64xf32, #tpu.memory_space<vmem>>, vector<1x32x64xf32>
    %22 = vector.shape_cast %21 : vector<1x32x64xf32> to vector<32x64xf32>
    %c0_31 = arith.constant 0 : index
    %c0_32 = arith.constant 0 : index
    %c0_33 = arith.constant 0 : index
    %23 = vector.load %arg11[%c0_31, %c0_32, %c0_33] : memref<1x64x32xf32, #tpu.memory_space<vmem>>, vector<1x64x32xf32>
    %24 = vector.shape_cast %23 : vector<1x64x32xf32> to vector<64x32xf32>
    %cst = arith.constant dense<0.000000e+00> : vector<8x32xf32>
    %25 = tpu.matmul %4, %6, %cst {dimension_numbers = #tpu.dot_dimension_numbers<[1], [0], [0], [1], [0, 0, 1, 1], [], []>} : vector<8x32xf32>, vector<32x32xf32>, vector<8x32xf32> -> vector<8x32xf32>
    %cst_34 = arith.constant 0.353553385 : f32
    %26 = vector.broadcast %cst_34 : f32 to vector<8x32xf32>
    %27 = arith.mulf %25, %26 : vector<8x32xf32>
    %cst_35 = arith.constant dense<0.000000e+00> : vector<8x32xf32>
    %28 = tpu.matmul %4, %8, %cst_35 {dimension_numbers = #tpu.dot_dimension_numbers<[1], [0], [0], [1], [0, 0, 1, 1], [], []>} : vector<8x32xf32>, vector<32x32xf32>, vector<8x32xf32> -> vector<8x32xf32>
    %cst_36 = arith.constant dense<0.000000e+00> : vector<8x32xf32>
    %29 = tpu.matmul %4, %10, %cst_36 {dimension_numbers = #tpu.dot_dimension_numbers<[1], [0], [0], [1], [0, 0, 1, 1], [], []>} : vector<8x32xf32>, vector<32x32xf32>, vector<8x32xf32> -> vector<8x32xf32>
    %30 = vector.extract_strided_slice %27 {offsets = [0, 0], sizes = [8, 8], strides = [1, 1]} : vector<8x32xf32> to vector<8x8xf32>
    %31 = vector.extract_strided_slice %27 {offsets = [0, 8], sizes = [8, 8], strides = [1, 1]} : vector<8x32xf32> to vector<8x8xf32>
    %32 = vector.extract_strided_slice %27 {offsets = [0, 16], sizes = [8, 8], strides = [1, 1]} : vector<8x32xf32> to vector<8x8xf32>
    %33 = vector.extract_strided_slice %27 {offsets = [0, 24], sizes = [8, 8], strides = [1, 1]} : vector<8x32xf32> to vector<8x8xf32>
    %34 = vector.shape_cast %30 : vector<8x8xf32> to vector<1x8x8xf32>
    %35 = vector.shape_cast %31 : vector<8x8xf32> to vector<1x8x8xf32>
    %36 = vector.shape_cast %32 : vector<8x8xf32> to vector<1x8x8xf32>
    %37 = vector.shape_cast %33 : vector<8x8xf32> to vector<1x8x8xf32>
    %38 = tpu.concatenate %34, %35, %36, %37 in 0 : vector<1x8x8xf32>, vector<1x8x8xf32>, vector<1x8x8xf32>, vector<1x8x8xf32> -> vector<4x8x8xf32>
    %39 = vector.extract_strided_slice %28 {offsets = [0, 0], sizes = [8, 8], strides = [1, 1]} : vector<8x32xf32> to vector<8x8xf32>
    %40 = vector.extract_strided_slice %28 {offsets = [0, 8], sizes = [8, 8], strides = [1, 1]} : vector<8x32xf32> to vector<8x8xf32>
    %41 = vector.extract_strided_slice %28 {offsets = [0, 16], sizes = [8, 8], strides = [1, 1]} : vector<8x32xf32> to vector<8x8xf32>
    %42 = vector.extract_strided_slice %28 {offsets = [0, 24], sizes = [8, 8], strides = [1, 1]} : vector<8x32xf32> to vector<8x8xf32>
    %43 = vector.shape_cast %39 : vector<8x8xf32> to vector<1x8x8xf32>
    %44 = vector.shape_cast %40 : vector<8x8xf32> to vector<1x8x8xf32>
    %45 = vector.shape_cast %41 : vector<8x8xf32> to vector<1x8x8xf32>
    %46 = vector.shape_cast %42 : vector<8x8xf32> to vector<1x8x8xf32>
    %47 = tpu.concatenate %43, %44, %45, %46 in 0 : vector<1x8x8xf32>, vector<1x8x8xf32>, vector<1x8x8xf32>, vector<1x8x8xf32> -> vector<4x8x8xf32>
    %48 = vector.extract_strided_slice %29 {offsets = [0, 0], sizes = [8, 8], strides = [1, 1]} : vector<8x32xf32> to vector<8x8xf32>
    %49 = vector.extract_strided_slice %29 {offsets = [0, 8], sizes = [8, 8], strides = [1, 1]} : vector<8x32xf32> to vector<8x8xf32>
    %50 = vector.extract_strided_slice %29 {offsets = [0, 16], sizes = [8, 8], strides = [1, 1]} : vector<8x32xf32> to vector<8x8xf32>
    %51 = vector.extract_strided_slice %29 {offsets = [0, 24], sizes = [8, 8], strides = [1, 1]} : vector<8x32xf32> to vector<8x8xf32>
    %52 = vector.shape_cast %48 : vector<8x8xf32> to vector<1x8x8xf32>
    %53 = vector.shape_cast %49 : vector<8x8xf32> to vector<1x8x8xf32>
    %54 = vector.shape_cast %50 : vector<8x8xf32> to vector<1x8x8xf32>
    %55 = vector.shape_cast %51 : vector<8x8xf32> to vector<1x8x8xf32>
    %56 = tpu.concatenate %52, %53, %54, %55 in 0 : vector<1x8x8xf32>, vector<1x8x8xf32>, vector<1x8x8xf32>, vector<1x8x8xf32> -> vector<4x8x8xf32>
    "tpu.trace_start"() <{level = 10 : i32, message = "hqc,hkc->hqk"}> : () -> ()
    %cst_37 = arith.constant dense<0.000000e+00> : vector<4x8x8xf32>
    %57 = tpu.matmul %38, %47, %cst_37 {dimension_numbers = #tpu.dot_dimension_numbers<[2], [2], [1], [1], [0, 0, 0, 1, 1, 1], [0], [0]>} : vector<4x8x8xf32>, vector<4x8x8xf32>, vector<4x8x8xf32> -> vector<4x8x8xf32>
    "tpu.trace_stop"() : () -> ()
    %c0_38 = arith.constant 0 : index
    %c0_39 = arith.constant 0 : index
    %c0_40 = arith.constant 0 : index
    %58 = vector.load %arg3[%c0_38, %c0_39, %c0_40] : memref<1x1x8xf32, #tpu.memory_space<vmem>>, vector<1x1x8xf32>
    %59 = vector.shape_cast %58 : vector<1x1x8xf32> to vector<1x8xf32>
    %cst_41 = arith.constant 5.000000e-01 : f32
    %60 = vector.broadcast %cst_41 : f32 to vector<1x8xf32>
    %61 = arith.cmpf ogt, %59, %60 : vector<1x8xf32>
    %62 = vector.shape_cast %61 : vector<1x8xi1> to vector<1x1x8xi1>
    %cst_42 = arith.constant -1.000000e+09 : f32
    %63 = vector.shape_cast %62 : vector<1x1x8xi1> to vector<1x1x8xi1>
    %64 = vector.broadcast %63 : vector<1x1x8xi1> to vector<4x8x8xi1>
    %65 = vector.broadcast %cst_42 : f32 to vector<4x8x8xf32>
    %66 = arith.select %64, %65, %57 : vector<4x8x8xi1>, vector<4x8x8xf32>
    %cst_43 = arith.constant dense<0xFF800000> : vector<4x8xf32>
    %67 = vector.multi_reduction <maximumf>, %66, %cst_43 [2] : vector<4x8x8xf32> to vector<4x8xf32>
    %68 = vector.shape_cast %67 : vector<4x8xf32> to vector<4x8x1xf32>
    %69 = vector.broadcast %68 : vector<4x8x1xf32> to vector<4x8x8xf32>
    %70 = arith.subf %66, %69 : vector<4x8x8xf32>
    %71 = math.exp %70 : vector<4x8x8xf32>
    %cst_44 = arith.constant dense<0.000000e+00> : vector<4x8xf32>
    %72 = vector.multi_reduction <add>, %71, %cst_44 [2] : vector<4x8x8xf32> to vector<4x8xf32>
    %73 = vector.shape_cast %72 : vector<4x8xf32> to vector<4x8x1xf32>
    %74 = tpu.reciprocal %73 {approx = true} : vector<4x8x1xf32> -> vector<4x8x1xf32>
    %75 = vector.broadcast %74 : vector<4x8x1xf32> to vector<4x8x8xf32>
    %76 = arith.mulf %71, %75 : vector<4x8x8xf32>
    %c0_45 = arith.constant 0 : index
    %c0_46 = arith.constant 0 : index
    %c0_47 = arith.constant 0 : index
    %c0_48 = arith.constant 0 : index
    %c0_49 = arith.constant 0 : index
    %77 = vector.load %arg15[%c0_45, %c0_46, %c0_47, %c0_48, %c0_49] : memref<1x1x4x8x8xf32, #tpu.memory_space<vmem>>, vector<1x1x4x8x8xf32>
    %78 = vector.shape_cast %77 : vector<1x1x4x8x8xf32> to vector<4x8x8xf32>
    %79 = vector.shape_cast %76 : vector<4x8x8xf32> to vector<1x1x4x8x8xf32>
    tpu.vector_store %arg15[%c0_45, %c0_46, %c0_47, %c0_48, %c0_49], %79 {strides = array<i32>} : memref<1x1x4x8x8xf32, #tpu.memory_space<vmem>>, vector<1x1x4x8x8xf32>,
    "tpu.trace_start"() <{level = 10 : i32, message = "hqk,hkv->hqv"}> : () -> ()
    %cst_50 = arith.constant dense<0.000000e+00> : vector<4x8x8xf32>
    %80 = tpu.matmul %76, %56, %cst_50 {dimension_numbers = #tpu.dot_dimension_numbers<[2], [1], [1], [2], [0, 0, 0, 1, 1, 2], [0], [0]>} : vector<4x8x8xf32>, vector<4x8x8xf32>, vector<4x8x8xf32> -> vector<4x8x8xf32>
    "tpu.trace_stop"() : () -> ()
    "tpu.trace_start"() <{level = 10 : i32, message = "hqv,hvd->hqd"}> : () -> ()
    %cst_51 = arith.constant dense<0.000000e+00> : vector<4x8x32xf32>
    %81 = tpu.matmul %80, %12, %cst_51 {dimension_numbers = #tpu.dot_dimension_numbers<[2], [1], [1], [2], [0, 0, 0, 1, 1, 2], [0], [0]>} : vector<4x8x8xf32>, vector<4x8x32xf32>, vector<4x8x32xf32> -> vector<4x8x32xf32>
    "tpu.trace_stop"() : () -> ()
    %cst_52 = arith.constant dense<0.000000e+00> : vector<8x32xf32>
    %82 = vector.multi_reduction <add>, %81, %cst_52 [0] : vector<4x8x32xf32> to vector<8x32xf32>
    %83 = arith.addf %82, %4 : vector<8x32xf32>
    %cst_53 = arith.constant dense<0.000000e+00> : vector<8xf32>
    %84 = vector.multi_reduction <add>, %83, %cst_53 [1] : vector<8x32xf32> to vector<8xf32>
    %85 = vector.shape_cast %84 : vector<8xf32> to vector<8x1xf32>
    %cst_54 = arith.constant 3.200000e+01 : f32
    %86 = vector.broadcast %cst_54 : f32 to vector<8x1xf32>
    %87 = arith.divf %85, %86 : vector<8x1xf32>
    %88 = arith.mulf %83, %83 : vector<8x32xf32>
    %cst_55 = arith.constant dense<0.000000e+00> : vector<8xf32>
    %89 = vector.multi_reduction <add>, %88, %cst_55 [1] : vector<8x32xf32> to vector<8xf32>
    %90 = vector.shape_cast %89 : vector<8xf32> to vector<8x1xf32>
    %cst_56 = arith.constant 3.200000e+01 : f32
    %91 = vector.broadcast %cst_56 : f32 to vector<8x1xf32>
    %92 = arith.divf %90, %91 : vector<8x1xf32>
    %93 = arith.mulf %87, %87 : vector<8x1xf32>
    %94 = arith.subf %92, %93 : vector<8x1xf32>
    %95 = vector.broadcast %87 : vector<8x1xf32> to vector<8x32xf32>
    %96 = arith.subf %83, %95 : vector<8x32xf32>
    %cst_57 = arith.constant 9.99999974E-6 : f32
    %97 = vector.broadcast %cst_57 : f32 to vector<8x1xf32>
    %98 = arith.addf %94, %97 : vector<8x1xf32>
    %99 = math.rsqrt %98 : vector<8x1xf32>
    %100 = vector.broadcast %99 : vector<8x1xf32> to vector<8x32xf32>
    %101 = arith.mulf %96, %100 : vector<8x32xf32>
    %102 = vector.shape_cast %14 : vector<32xf32> to vector<1x32xf32>
    %103 = vector.broadcast %102 : vector<1x32xf32> to vector<8x32xf32>
    %104 = arith.mulf %101, %103 : vector<8x32xf32>
    %105 = vector.shape_cast %16 : vector<32xf32> to vector<1x32xf32>
    %106 = vector.broadcast %105 : vector<1x32xf32> to vector<8x32xf32>
    %107 = arith.addf %104, %106 : vector<8x32xf32>
    %cst_58 = arith.constant dense<0.000000e+00> : vector<8x64xf32>
    %108 = tpu.matmul %107, %22, %cst_58 {dimension_numbers = #tpu.dot_dimension_numbers<[1], [0], [0], [1], [0, 0, 1, 1], [], []>} : vector<8x32xf32>, vector<32x64xf32>, vector<8x64xf32> -> vector<8x64xf32>
    %cst_59 = arith.constant 0.000000e+00 : f32
    %109 = vector.broadcast %cst_59 : f32 to vector<8x64xf32>
    %110 = arith.maximumf %108, %109 : vector<8x64xf32>
    %cst_60 = arith.constant dense<0.000000e+00> : vector<8x32xf32>
    %111 = tpu.matmul %110, %24, %cst_60 {dimension_numbers = #tpu.dot_dimension_numbers<[1], [0], [0], [1], [0, 0, 1, 1], [], []>} : vector<8x64xf32>, vector<64x32xf32>, vector<8x32xf32> -> vector<8x32xf32>
    %112 = arith.addf %111, %107 : vector<8x32xf32>
    %cst_61 = arith.constant dense<0.000000e+00> : vector<8xf32>
    %113 = vector.multi_reduction <add>, %112, %cst_61 [1] : vector<8x32xf32> to vector<8xf32>
    %114 = vector.shape_cast %113 : vector<8xf32> to vector<8x1xf32>
    %cst_62 = arith.constant 3.200000e+01 : f32
    %115 = vector.broadcast %cst_62 : f32 to vector<8x1xf32>
    %116 = arith.divf %114, %115 : vector<8x1xf32>
    %117 = arith.mulf %112, %112 : vector<8x32xf32>
    %cst_63 = arith.constant dense<0.000000e+00> : vector<8xf32>
    %118 = vector.multi_reduction <add>, %117, %cst_63 [1] : vector<8x32xf32> to vector<8xf32>
    %119 = vector.shape_cast %118 : vector<8xf32> to vector<8x1xf32>
    %cst_64 = arith.constant 3.200000e+01 : f32
    %120 = vector.broadcast %cst_64 : f32 to vector<8x1xf32>
    %121 = arith.divf %119, %120 : vector<8x1xf32>
    %122 = arith.mulf %116, %116 : vector<8x1xf32>
    %123 = arith.subf %121, %122 : vector<8x1xf32>
    %124 = vector.broadcast %116 : vector<8x1xf32> to vector<8x32xf32>
    %125 = arith.subf %112, %124 : vector<8x32xf32>
    %cst_65 = arith.constant 9.99999974E-6 : f32
    %126 = vector.broadcast %cst_65 : f32 to vector<8x1xf32>
    %127 = arith.addf %123, %126 : vector<8x1xf32>
    %128 = math.rsqrt %127 : vector<8x1xf32>
    %129 = vector.broadcast %128 : vector<8x1xf32> to vector<8x32xf32>
    %130 = arith.mulf %125, %129 : vector<8x32xf32>
    %131 = vector.shape_cast %18 : vector<32xf32> to vector<1x32xf32>
    %132 = vector.broadcast %131 : vector<1x32xf32> to vector<8x32xf32>
    %133 = arith.mulf %130, %132 : vector<8x32xf32>
    %134 = vector.shape_cast %20 : vector<32xf32> to vector<1x32xf32>
    %135 = vector.broadcast %134 : vector<1x32xf32> to vector<8x32xf32>
    %136 = arith.addf %133, %135 : vector<8x32xf32>
    %137 = vector.shape_cast %136 : vector<8x32xf32> to vector<1x8x32xf32>
    %c0_66 = arith.constant 0 : index
    %c0_67 = arith.constant 0 : index
    %c0_68 = arith.constant 0 : index
    %138 = vector.load %arg14[%c0_66, %c0_67, %c0_68] : memref<1x8x32xf32, #tpu.memory_space<vmem>>, vector<1x8x32xf32>
    tpu.vector_store %arg14[%c0_66, %c0_67, %c0_68], %137 {strides = array<i32>} : memref<1x8x32xf32, #tpu.memory_space<vmem>>, vector<1x8x32xf32>,
    return
  }
  func.func @transform_0(%arg0: i32, %arg1: i32) -> (i32, i32, i32) {
    %c0_i32 = arith.constant 0 : i32
    %c0_i32_0 = arith.constant 0 : i32
    %c0_i32_1 = arith.constant 0 : i32
    return %arg0, %c0_i32, %c0_i32_0 : i32, i32, i32
  }
  func.func @transform_1(%arg0: i32, %arg1: i32) -> (i32, i32, i32) {
    %c0_i32 = arith.constant 0 : i32
    %c0_i32_0 = arith.constant 0 : i32
    %c0_i32_1 = arith.constant 0 : i32
    return %arg0, %c0_i32, %c0_i32_0 : i32, i32, i32
  }
  func.func @transform_2(%arg0: i32, %arg1: i32) -> (i32, i32, i32) {
    %c0_i32 = arith.constant 0 : i32
    %c0_i32_0 = arith.constant 0 : i32
    %c0_i32_1 = arith.constant 0 : i32
    return %arg1, %c0_i32, %c0_i32_0 : i32, i32, i32
  }
  func.func @transform_3(%arg0: i32, %arg1: i32) -> (i32, i32, i32) {
    %c0_i32 = arith.constant 0 : i32
    %c0_i32_0 = arith.constant 0 : i32
    %c0_i32_1 = arith.constant 0 : i32
    return %arg1, %c0_i32, %c0_i32_0 : i32, i32, i32
  }
  func.func @transform_4(%arg0: i32, %arg1: i32) -> (i32, i32, i32) {
    %c0_i32 = arith.constant 0 : i32
    %c0_i32_0 = arith.constant 0 : i32
    %c0_i32_1 = arith.constant 0 : i32
    return %arg1, %c0_i32, %c0_i32_0 : i32, i32, i32
  }
  func.func @transform_5(%arg0: i32, %arg1: i32) -> (i32, i32, i32, i32) {
    %c0_i32 = arith.constant 0 : i32
    %c0_i32_0 = arith.constant 0 : i32
    %c0_i32_1 = arith.constant 0 : i32
    %c0_i32_2 = arith.constant 0 : i32
    return %arg1, %c0_i32, %c0_i32_0, %c0_i32_1 : i32, i32, i32, i32
  }
  func.func @transform_6(%arg0: i32, %arg1: i32) -> (i32, i32, i32) {
    %c0_i32 = arith.constant 0 : i32
    %c0_i32_0 = arith.constant 0 : i32
    %c0_i32_1 = arith.constant 0 : i32
    return %arg1, %c0_i32, %c0_i32_0 : i32, i32, i32
  }
  func.func @transform_7(%arg0: i32, %arg1: i32) -> (i32, i32, i32) {
    %c0_i32 = arith.constant 0 : i32
    %c0_i32_0 = arith.constant 0 : i32
    %c0_i32_1 = arith.constant 0 : i32
    return %arg1, %c0_i32, %c0_i32_0 : i32, i32, i32
  }
  func.func @transform_8(%arg0: i32, %arg1: i32) -> (i32, i32, i32) {
    %c0_i32 = arith.constant 0 : i32
    %c0_i32_0 = arith.constant 0 : i32
    %c0_i32_1 = arith.constant 0 : i32
    return %arg1, %c0_i32, %c0_i32_0 : i32, i32, i32
  }
  func.func @transform_9(%arg0: i32, %arg1: i32) -> (i32, i32, i32) {
    %c0_i32 = arith.constant 0 : i32
    %c0_i32_0 = arith.constant 0 : i32
    %c0_i32_1 = arith.constant 0 : i32
    return %arg1, %c0_i32, %c0_i32_0 : i32, i32, i32
  }
  func.func @transform_10(%arg0: i32, %arg1: i32) -> (i32, i32, i32) {
    %c0_i32 = arith.constant 0 : i32
    %c0_i32_0 = arith.constant 0 : i32
    %c0_i32_1 = arith.constant 0 : i32
    return %arg1, %c0_i32, %c0_i32_0 : i32, i32, i32
  }
  func.func @transform_11(%arg0: i32, %arg1: i32) -> (i32, i32, i32) {
    %c0_i32 = arith.constant 0 : i32
    %c0_i32_0 = arith.constant 0 : i32
    %c0_i32_1 = arith.constant 0 : i32
    return %arg1, %c0_i32, %c0_i32_0 : i32, i32, i32
  }
  func.func @transform_12(%arg0: i32, %arg1: i32) -> (i32, i32, i32) {
    %c0_i32 = arith.constant 0 : i32
    %c0_i32_0 = arith.constant 0 : i32
    %c0_i32_1 = arith.constant 0 : i32
    return %arg0, %c0_i32, %c0_i32_0 : i32, i32, i32
  }
  func.func @transform_13(%arg0: i32, %arg1: i32) -> (i32, i32, i32, i32, i32) {
    %c0_i32 = arith.constant 0 : i32
    %c0_i32_0 = arith.constant 0 : i32
    %c0_i32_1 = arith.constant 0 : i32
    %c0_i32_2 = arith.constant 0 : i32
    return %arg1, %arg0, %c0_i32, %c0_i32_0, %c0_i32_1 : i32, i32, i32, i32, i32
  }
}

</mosaic_0001>

<bundles_post_ra>
// kernel: tpu_custom_call.1
= control target key start
LH: loop header
LB: loop body
LE: loop exit
PB: predicated region body
PF: predicated region fallthrough
CT: control target
= control target key end

     0   :  { %s3895_s0 = inlined_call_operand.hbm [shape: f32[2,8,32], index: 0, kind: input, shape index: {}]   ;;  %s3896_s1 = inlined_call_operand.hbm [shape: f32[2,1,8], index: 1, kind: input, shape index: {}]   ;;  %s3897_s2 = inlined_call_operand.vmem [shape: f32[2,32,32], index: 2, kind: input, shape index: {}]   ;;  %s3898_s3 = inlined_call_operand.vmem [shape: f32[2,32,32], index: 3, kind: input, shape index: {}]   ;;  %s3899_s4 = inlined_call_operand.vmem [shape: f32[2,32,32], index: 4, kind: input, shape index: {}]   ;;  %s3900_s5 = inlined_call_operand.hbm [shape: f32[2,4,8,32], index: 5, kind: input, shape index: {}]   ;;  %s3901_s6 = inlined_call_operand.vmem [shape: f32[2,1,32], index: 6, kind: input, shape index: {}]   ;;  %s3902_s7 = inlined_call_operand.vmem [shape: f32[2,1,32], index: 7, kind: input, shape index: {}]   ;;  %s3903_s8 = inlined_call_operand.hbm [shape: f32[2,32,64], index: 8, kind: input, shape index: {}]   ;;  %s3904_s9 = inlined_call_operand.vmem [shape: f32[2,64,32], index: 9, kind: input, shape index: {}]   ;;  %s3905_s10 = inlined_call_operand.vmem [shape: f32[2,1,32], index: 10, kind: input, shape index: {}]   ;;  %s3906_s11 = inlined_call_operand.vmem [shape: f32[2,1,32], index: 11, kind: input, shape index: {}]   ;;  %s3907_s12 = inlined_call_operand.hbm [shape: f32[2,8,32], index: 12, kind: output, shape index: {0}]   ;;  %s3908_s13 = inlined_call_operand.hbm [shape: f32[2,2,4,8,8], index: 13, kind: output, shape index: {1}]  }
   0x1   :  { %3935 = sst [smem:[#allocation39_spill]] %s3895_s0 }
   0x2   :  { %3936 = sst [smem:[#allocation40_spill]] %s3896_s1 }
   0x3   :  { %3937 = sst [smem:[#allocation41_spill]] %s3897_s2 }
   0x4   :  { %3938 = sst [smem:[#allocation42_spill]] %s3898_s3 }
   0x5   :  { %3939 = sst [smem:[#allocation43_spill]] %s3899_s4 }
   0x6   :  { %3940 = sst [smem:[#allocation44_spill]] %s3900_s5 }
   0x7   :  { %3941 = sst [smem:[#allocation45_spill]] %s3901_s6 }
   0x8   :  { %3942 = sst [smem:[#allocation46_spill]] %s3902_s7 }
   0x9   :  { %3943 = sst [smem:[#allocation47_spill]] %s3903_s8 }
   0xa   :  { %3944 = sst [smem:[#allocation48_spill]] %s3904_s9 }
   0xb   :  { %3945 = sst [smem:[#allocation49_spill]] %s3905_s10 }
   0xc   :  { %3946 = sst [smem:[#allocation50_spill]] %s3906_s11 }
   0xd   :  { %3947 = sst [smem:[#allocation51_spill]] %s3907_s12 }
   0xe   :  { %3948 = sst [smem:[#allocation52_spill]] %s3908_s13 }
   0xf   :  { %19 = vsyncpa [#allocation3], 0 }
  0x10   :  { %21 = vsyncpa [#allocation3 + $0x1], 0 }
  0x11   :  { %22 = vsyncpa [#allocation6], 0 }
  0x12   :  { %24 = vsyncpa [#allocation6 + $0x1], 0 }
  0x13   :  { %25 = vsyncpa [#allocation9], 0 }
  0x14   :  { %27 = vsyncpa [#allocation9 + $0x1], 0 }
  0x15   :  { %28 = vsyncpa [#allocation4], 0 }
  0x16   :  { %30 = vsyncpa [#allocation4 + $0x1], 0 }
  0x17   :  { %31 = vsyncpa [#allocation12], 0 }
  0x18   :  { %33 = vsyncpa [#allocation12 + $0x1], 0  ;;  %s3269_s25 = smov 0   ;;  %s3271_s26 = smov 0  }
  0x19   :  { %s3273_s27 = smov 0   ;;  %s3275_s28 = smov 0  }
  0x1a   :  { %s3277_s29 = smov 0   ;;  %s3279_s30 = smov 0  }
  0x1b   :  { %s3281_s14 = smov 0   ;;  %s3283_s15 = smov 0  }
  0x1c   :  { %s3285_s16 = smov 0   ;;  %s3287_s17 = smov 0  }
  0x1d   :  { %s3289_s18 = smov 0   ;;  %s3291_s19 = smov 0  }
  0x1e   :  { %s3293_s20 = smov 0   ;;  %s3295_s21 = smov 0  }
  0x1f LB: > { %3949 = sst [smem:[#allocation19_spill]] %s3129_s25  ;;  %s3340_s22 = sadd.s32 4294967295, %s3181_s21   ;;  %s3181_s21 = sphi %s3295_s21, %s39_s21   ;;  %s3177_s20 = sphi %s3293_s20, %s4028_s20   ;;  %s3173_s19 = sphi %s3291_s19, %s4027_s19   ;;  %s3169_s18 = sphi %s3289_s18, %s4026_s18   ;;  %s3165_s17 = sphi %s3287_s17, %s4025_s17   ;;  %s3161_s16 = sphi %s3285_s16, %s4024_s16   ;;  %s3157_s15 = sphi %s3283_s15, %s4023_s15   ;;  %s3153_s14 = sphi %s3281_s14, %s4022_s14   ;;  %s3149_s30 = sphi %s3279_s30, %s4021_s30   ;;  %s3145_s29 = sphi %s3277_s29, %s4020_s29   ;;  %s3141_s28 = sphi %s3275_s28, %s4019_s28   ;;  %s3137_s27 = sphi %s3273_s27, %s4018_s27   ;;  %s3133_s26 = sphi %s3271_s26, %s4030_s26   ;;  %s3129_s25 = sphi %s3269_s25, %s4029_s25  }
  0x20   : > { %3950 = sst [smem:[#allocation20_spill]] %s3137_s27  ;;  %s2465_s23 = sadd.s32 4294967294, %s3181_s21  }
  0x21   : > { %3951 = sst [smem:[#allocation21_spill]] %s3145_s29  ;;  %s48_s24 = sadd.s32 1, %s3173_s19 }
  0x22   : > { %3952 = sst [smem:[#allocation22_spill]] %s3149_s30  ;;  %s51_s12 = sadd.s32 1, %s3177_s20 }
  0x23   : > { %3953 = sst [smem:[#allocation23_spill]] %s3153_s14  ;;  %p49_p0 = scmp.ge.s32.totalorder %s48_s24, 2 }
  0x24   : > { %3954 = sst [smem:[#allocation24_spill]] %s3157_s15  ;;  %s58_s13 = sadd.s32 1, %s3161_s16 }
  0x25   : > { %3955 = sst [smem:[#allocation25_spill]] %s3161_s16  ;;  %p65_p1 = scmp.ne.s32.totalorder %s3161_s16, %s3157_s15 }
  0x26   : > { %3956 = sst [smem:[#allocation26_spill]] %s3169_s18  ;;  %p66_p2 = scmp.eq.s32.totalorder %s3181_s21, 0 }
  0x27   : > { %3957 = sst [smem:[#allocation27_spill]] %s3173_s19  ;;  %s4032_s24 = smov (%p49_p0, %s48_s24), 0 }
  0x28   : > { %3958 = sst [smem:[#allocation28_spill]] %s3177_s20  ;;  %s4034_s12 = smov (!%p49_p0, %s51_s12), %s3177_s20 }
  0x29   : > { %3959 = sst [smem:[#allocation29_spill]] %s3181_s21  ;;  %p3357_p3 = por %p66_p2, %p65_p1 }
  0x2a   : > { %3960 = sst [smem:[#allocation30_spill]] %s4032_s24  ;;  %p71_p4 = scmp.ne.s32.totalorder %s3157_s15, %s3153_s14 }
  0x2b   : > { %p53_p5 = scmp.ge.s32.totalorder %s4034_s12, 2  ;;  %p72_p6 = scmp.eq.s32.totalorder %s3340_s22, 0 }
  0x2c   : > { %s185_s11 = ssub.s32 %s3173_s19, %s4032_s24  ;;  %s188_s9 = sadd.s32 1, %s3149_s30 }
  0x2d   : > { %s4036_s12 = smov (%p53_p5, %s4034_s12), 0  ;;  %p3374_p7 = por %p72_p6, %p71_p4 }
  0x2e   : > { %3962 = sst [smem:[#allocation31_spill]] %s4036_s12  ;;  %p186_p8 = scmp.eq.s32.totalorder %s185_s11, 0 }
  0x2f   : > { %s55_s7 = ssub.s32 %s3177_s20, %s4036_s12  ;;  %p195_p9 = scmp.ne.s32.totalorder %s3149_s30, %s3145_s29 }
  0x30   : > { %p56_p10 = scmp.eq.s32.totalorder %s55_s7, 0  ;;  %p201_p11 = scmp.ne.s32.totalorder %s3145_s29, %s3141_s28 }
  0x31   : > { %s3385_s24 = scalar_select %p186_p8, %s3149_s30, %s188_s9  }
  0x32   : > { %s3388_s4 = scalar_select %p56_p10, %s3161_s16, %s58_s13  }
  0x33   : > { %3964 = sst [smem:[#allocation32_spill]] %s3385_s24  ;;  %p3392_p12 = por %p195_p9, %p66_p2 }
  0x34   : > { %3965 = sst [smem:[#allocation33_spill]] %s3388_s4  ;;  %p3398_p13 = por %p201_p11, %p72_p6 }
  0x35   : > { %p381_p0 = scmp.eq.s32.totalorder %s3340_s22, 3  ;;  %p387_p5 = scmp.eq.s32.totalorder %s2465_s23, 3 }
  0x36   : > { %s3967_s12 = scalar_select %p3398_p13, 1, 0 }
  0x37   : > { %s395_s9 = sor.u32 %s185_s11, %s55_s7  ;;  %s398_s28 = sadd.s32 1, %s3137_s27 }
  0x38   : > { %p3407_p8 = por %p381_p0, %p65_p1  ;;  %p3414_p2 = por %p387_p5, %p71_p4 }
  0x39   : > { %p396_p6 = scmp.eq.s32.totalorder %s395_s9, 0  ;;  %p408_p9 = scmp.ne.s32.totalorder %s3137_s27, %s3133_s26 }
  0x3a   : > { %s3968_s13 = scalar_select %p3407_p8, 1, 0 }
  0x3b   : > { %s3970_s4 = scalar_select %p3414_p2, 1, 0 }
  0x3c   : > { %3969 = sst [smem:[#allocation34_spill]] %s3968_s13  ;;  %p414_p10 = scmp.ne.s32.totalorder %s3133_s26, %s3129_s25 }
  0x3d   : > { %3971 = sst [smem:[#allocation35_spill]] %s3970_s4  ;;  %p3425_p11 = por %p408_p9, %p381_p0 }
  0x3e   : > { %s3423_s24 = scalar_select %p396_p6, %s3137_s27, %s398_s28  }
  0x3f   : > { %s3973_s23 = scalar_select %p3425_p11, 1, 0 }
  0x40   : > { %3972 = sst [smem:[#allocation36_spill]] %s3423_s24  ;;  %p3429_p13 = por %p414_p10, %p387_p5 }
  0x41   : > { %3974 = sst [smem:[#allocation37_spill]] %s3973_s23  ;;  %p2739_p1 = scmp.lt.s32.totalorder %s3181_s21, 4 }
  0x42   : > { %s3975_s7 = scalar_select %p3429_p13, 1, 0 }
  0x43   : > { %s3435_s11 = sand.u32 1, %s3161_s16   ;;  %s453_s14 = sand.u32 1, %s3181_s21  }
  0x44   : > { %3976 = sst [smem:[#allocation38_spill]] %s3975_s7  ;;  %p3440_p4 = pnand %p2739_p1, %p3357_p3 }
  0x45   : > { %s2470_s28 = sshll.u32 %s3177_s20, 4  ;;  %s456_s24 = scalar_lea.vmem [#allocation5], %s3435_s11 }
  0x46   : > { %s463_s27 = sshll.u32 %s456_s24, 4  ;;  %s3978_s1 = sld [smem:[#allocation40_spill]]  ;;  %s464_s27 = int_to_ptr.vmem [resolvable:$true] %s463_s27 }
  0x47   : > { %p3451_p0 = pnand %p2739_p1, %p3392_p12  ;;  %s3455_s18 = scalar_lea.sflag [#allocation6], %s453_s14 }
  0x48   : > { %p3925_p3 = pneg %p3440_p4  ;;  %s2896_s7 = scalar_lea.vmem %s464_s27, 16 }
  0x49   : > { %p2897_p5 = scmp.ne.s32.totalorder %s464_s27, %s2896_s7  ;;  %s3183_s24 = smov [#allocation5]  }
  0x4a   : > { %s2901_s23 = sshll.u32 %s3183_s24, 4  ;;  %s2902_s23 = int_to_ptr.vmem [resolvable:$false] %s2901_s23 }
  0x4b   : > { %p2899_p6 = pnand %p2897_p5, %p3925_p3  ;;  %s2903_s4 = scalar_lea.vmem %s2902_s23, 32 }
  0x4c   : > { %s461_s13 = scalar_lea.hbm %s3978_s1, %s2470_s28  ;;  %p2904_p10 = scmp.lt.s32.totalorder %s464_s27, %s2902_s23 }
  0x4d   : > { %p2900_p9 = pneg %p2899_p6  ;;  %p2905_p13 = scmp.lt.s32.totalorder %s2903_s4, %s2896_s7 }
  0x4f   : > { %p2906_p12 = por %p2905_p13, %p2904_p10 }
  0x51   : > { %p2907_p1 = pnand %p2906_p12, %p2900_p9 }
  0x53   : > { %2910 = shalt.err (!%p2907_p1)
}
  0x54   : > { %2725 = dma.hbm_to_vmem [thread:$0]  (!%p3440_p4), %s461_s13, 16, %s464_s27, %s3455_s18  }
  0x55   : > { %p2477_p5 = scmp.ge.s32.totalorder %s3181_s21, 1  ;;  %p566_p6 = scmp.lt.s32.totalorder %s3181_s21, 5 }
  0x56   : > { %s2468_s25 = sshll.u32 %s3435_s11, 3  ;;  %s2469_s14 = sshll.u32 %s3177_s20, 7 }
  0x57   : > { %p3467_p3 = pnand %p2477_p5, %p566_p6  ;;  %s3981_s0 = sld [smem:[#allocation39_spill]] }
  0x58   : > { %s439_s24 = scalar_lea.vmem [#allocation2], %s2468_s25  ;;  %s496_s1 = sand.u32 1, %s3149_s30  }
  0x59   : > { %s446_s4 = sshll.u32 %s439_s24, 4  ;;  %s436_s2 = scalar_lea.sflag [#allocation3], %s3435_s11  ;;  %s447_s4 = int_to_ptr.vmem [resolvable:$true] %s446_s4 }
  0x5a   : > { %s2924_s6 = scalar_lea.vmem %s447_s4, 128  ;;  %p3982_p9 = pneg %p3440_p4 }
  0x5b   : > { %p2925_p13 = scmp.ne.s32.totalorder %s447_s4, %s2924_s6  ;;  %s3184_s27 = smov [#allocation2]  }
  0x5c   : > { %s2929_s13 = sshll.u32 %s3184_s27, 4  ;;  %s2930_s13 = int_to_ptr.vmem [resolvable:$false] %s2929_s13 }
  0x5d   : > { %s444_s28 = scalar_lea.hbm %s3981_s0, %s2469_s14  ;;  %p2927_p10 = pnand %p2925_p13, %p3982_p9 }
  0x5e   : > { %s2931_s21 = scalar_lea.vmem %s2930_s13, 256  ;;  %p2932_p1 = scmp.lt.s32.totalorder %s447_s4, %s2930_s13 }
  0x5f   : > { %p2928_p12 = pneg %p2927_p10  ;;  %p2933_p5 = scmp.lt.s32.totalorder %s2931_s21, %s2924_s6 }
  0x61   : > { %p2934_p6 = por %p2933_p5, %p2932_p1 }
  0x63   : > { %p2935_p2 = pnand %p2934_p6, %p2928_p12 }
  0x65   : > { %2938 = shalt.err (!%p2935_p2)
}
  0x66   : > { %2722 = dma.hbm_to_vmem [thread:$0]  (!%p3440_p4), %s444_s28, 128, %s447_s4, %s436_s2  }
  0x67   : > { %s2471_s11 = sshll.u32 %s496_s1, 5  ;;  %s2525_s25 = sshll.u32 %s3173_s19, 9 }
  0x68   : > { %s3983_s5 = sld [smem:[#allocation44_spill]]  ;;  %s498_s24 = scalar_lea.vmem [#allocation7], %s2471_s11 }
  0x69   : > { %s505_s27 = sshll.u32 %s498_s24, 4  ;;  %p2941_p13 = pneg %p3451_p0  ;;  %s506_s27 = int_to_ptr.vmem [resolvable:$true] %s505_s27 }
  0x6a   : > { %s2952_s6 = scalar_lea.vmem %s506_s27, 512  ;;  %s3185_s21 = smov [#allocation7]  }
  0x6b   : > { %p2953_p2 = scmp.ne.s32.totalorder %s506_s27, %s2952_s6  ;;  %s2957_s2 = sshll.u32 %s3185_s21, 4  ;;  %s2958_s2 = int_to_ptr.vmem [resolvable:$false] %s2957_s2 }
  0x6c   : > { %s2959_s9 = scalar_lea.vmem %s2958_s2, 1024  ;;  %p2960_p4 = scmp.lt.s32.totalorder %s506_s27, %s2958_s2 }
  0x6d   : > { %p2955_p9 = pnand %p2953_p2, %p2941_p13  ;;  %p2961_p12 = scmp.lt.s32.totalorder %s2959_s9, %s2952_s6 }
  0x6e   : > { %s504_s7 = scalar_lea.hbm %s3983_s5, %s2525_s25 }
  0x6f   : > { %p2956_p10 = pneg %p2955_p9  ;;  %p2962_p1 = por %p2961_p12, %p2960_p4 }
  0x71   : > { %p2963_p5 = pnand %p2962_p1, %p2956_p10 }
  0x73   : > { %2966 = shalt.err (!%p2963_p5)
}
  0x74   : > { %s3186_s28 = smov 128   ;;  %s3187_s4 = smov 8  }
  0x75   : > { %2728 = dma.hbm_to_vmem [thread:$0]  (!%p3451_p0), %s504_s7, 512, %s506_s27, %s3455_s18, %s3186_s28, %s3186_s28, %s3187_s4  }
  0x76   : > { %s3984_s8 = sld [smem:[#allocation47_spill]]  ;;  %s531_s24 = scalar_lea.vmem [#allocation8], %s2471_s11 }
  0x77   : > { %s538_s21 = sshll.u32 %s531_s24, 4  ;;  %s528_s6 = scalar_lea.sflag [#allocation9], %s496_s1  ;;  %s539_s21 = int_to_ptr.vmem [resolvable:$true] %s538_s21 }
  0x78   : > { %s2980_s2 = scalar_lea.vmem %s539_s21, 512  ;;  %s3188_s9 = smov [#allocation8]  }
  0x79   : > { %p2981_p6 = scmp.ne.s32.totalorder %s539_s21, %s2980_s2  ;;  %s2985_s0 = sshll.u32 %s3188_s9, 4  ;;  %s2986_s0 = int_to_ptr.vmem [resolvable:$false] %s2985_s0 }
  0x7a   : > { %s2987_s5 = scalar_lea.vmem %s2986_s0, 1024  ;;  %p2988_p10 = scmp.lt.s32.totalorder %s539_s21, %s2986_s0 }
  0x7b   : > { %p2983_p2 = pnand %p2981_p6, %p2941_p13  ;;  %p2989_p4 = scmp.lt.s32.totalorder %s2987_s5, %s2980_s2 }
  0x7c   : > { %s537_s23 = scalar_lea.hbm %s3984_s8, %s2525_s25 }
  0x7d   : > { %p2984_p9 = pneg %p2983_p2  ;;  %p2990_p12 = por %p2989_p4, %p2988_p10 }
  0x7f   : > { %p2991_p1 = pnand %p2990_p12, %p2984_p9 }
  0x81   : > { %2994 = shalt.err (!%p2991_p1)
}
  0x82   : > { %2731 = dma.hbm_to_vmem [thread:$0]  (!%p3451_p0), %s537_s23, 512, %s539_s21, %s528_s6, %s3186_s28, %s3186_s28, %s3187_s4  }
  0x83   : > { %570 = sbr.rel (%p3467_p3) target bundleno = 2129 (0x851), region = 68  ;;  %s3510_s1 = sand.u32 (!%p3467_p3), 1, %s3157_s15  }
  0x84   : > { %s3929_s18 = sshll.u32 (!%p3467_p3), %s3510_s1, 3  ;;  %s573_s11 = scalar_lea.sflag (!%p3467_p3), [#allocation3], %s3510_s1 }
  0x85   : > { %s3516_s0 = scalar_lea.vmem (!%p3467_p3), [#allocation2], %s3929_s18 }
  0x88   : > { %3104 = dma.done.wait (%p3374_p7), %s573_s11, 128  }
  0x89   : > { %3106 = vsyncadd (%p3374_p7), %s573_s11, 4294967168  ;;  %s581_s5 = sand.u32 1, %s3340_s22  }
  0x8a   : > { %s582_s16 = scalar_lea.sflag [#allocation6], %s581_s5 }
  0x8b   : > { %3108 = dma.done.wait (%p3374_p7), %s582_s16, 16  }
  0x8c   : > { %3110 = vsyncadd (%p3374_p7), %s582_s16, 4294967280  ;;  %s591_s25 = sand.u32 1, %s3145_s29   ;;  %p3985_p0 = scmp.ne.s32.totalorder %s3967_s12, 0 }
  0x8d   : > { %s2479_s7 = sshll.u32 %s591_s25, 5 }
  0x8e   : > { %s3529_s27 = scalar_lea.vmem [#allocation7], %s2479_s7 }
  0x8f   : > { %3112 = dma.done.wait (%p3985_p0), %s582_s16, 512  }
  0x90   : > { %3114 = vsyncadd (%p3985_p0), %s582_s16, 4294966784  ;;  %s599_s22 = scalar_lea.sflag [#allocation9], %s591_s25  ;;  %s3535_s28 = scalar_lea.vmem [#allocation8], %s2479_s7 }
  0x91   : > { %3116 = dma.done.wait (%p3985_p0), %s599_s22, 512  }
  0x92   : > { %3118 = vsyncadd (%p3985_p0), %s599_s22, 4294966784  ;;  %s3928_s10 = sand.u32 1, %s3133_s26   ;;  %p696_p7 = scmp.lt.s32.totalorder %s3165_s17, 1 }
  0x93   : > { %s2482_s4 = sshll.u32 %s3928_s10, 5  ;;  %s3987_s9 = sld [smem:[#allocation41_spill]] }
  0x94   : > { %s3546_s13 = scalar_select %p696_p7, %s3165_s17, 1 }
  0x95   : > { %s3988_s25 = sld [smem:[#allocation42_spill]]  ;;  %s3590_s22 = scalar_lea.vmem [#allocation11], %s2482_s4 }
  0x96   : > { %s2527_s14 = sshll.u32 %s3546_s13, 5  ;;  %s3989_s3 = sld [smem:[#allocation43_spill]] }
  0x97   : > { %s3990_s19 = sld [smem:[#allocation46_spill]]  ;;  %s2530_s23 = sshll.u32 %s3546_s13, 6 }
  0x98   : > { %s3991_s6 = sld [smem:[#allocation49_spill]]  ;;  %p2491_p3 = scmp.ne.s32.totalorder %s3165_s17, 0 }
  0x99   : > { %s3556_s11 = scalar_lea.vmem %s3987_s9, %s2527_s14  ;;  %s3992_s30 = sld [smem:[#allocation48_spill]] }
  0x9a   : > { %s3993_s29 = sld [smem:[#allocation50_spill]] }
  0x9b   : > { %s3561_s7 = scalar_lea.vmem %s3988_s25, %s2527_s14 }
  0x9c   : > { %s3566_s18 = scalar_lea.vmem %s3989_s3, %s2527_s14  ;;  %s3994_s3 = sshll.u32 %s3510_s1, 3 }
  0x9d   : > { %s716_s12 = scalar_lea.vmem %s3990_s19, %s3546_s13  ;;  %s3588_s14 = scalar_lea.vmem [#allocation10], %s3994_s3 }
  0x9e   : > { %s724_s2 = scalar_lea.vmem %s3991_s6, %s3546_s13  ;;  %731 = sbr.rel (%p2491_p3) target bundleno = 165 (0xa5), region = 88 }
  0x9f   : > { %s3580_s5 = scalar_lea.vmem %s3992_s30, %s2530_s23 }
  0xa0   : > { %s727_s10 = scalar_lea.vmem %s3993_s29, %s3546_s13 }
  0xa3   : > { %v732_v0 = vld [vmem:[%s3516_s0] sm:$0xff]  ;;  %vm733_vm0 = vcmask 261120  }
  0xa4   : > { %734 = vst.msk [vmem:[%s3588_s14] sm:$0xff] %vm733_vm0, %v732_v0 }
  0xa5 PF: > { %v743_v1 = vld [vmem:[%s3561_s7 + $0x18] sm:$0xff]  ;;  %v3189_v3 = vmov 0.0   ;;  %v742_v4 = vld [vmem:[%s3561_s7 + $0x10] sm:$0xff]  ;;  %v741_v6 = vld [vmem:[%s3561_s7 + $0x8] sm:$0xff]  ;;  %vm768_vm1 = vcmask 261120   ;;  %vm3190_vm2 = vmmov 0   ;;  %v1307_v28 = vlaneseq }
  0xa6   : > { %v739_v2 = vld [vmem:[%s3556_s11 + $0x18] sm:$0xff]  ;;  %2595 = vmatprep.subr.mxu1 %v3189_v3  ;;  %2584 = vmatprep.subr.mxu0 %v3189_v3  ;;  %v738_v5 = vld [vmem:[%s3556_s11 + $0x10] sm:$0xff]  ;;  %v737_v7 = vld [vmem:[%s3556_s11 + $0x8] sm:$0xff]  ;;  %vm1007_vm3 = vcmask 64512   ;;  %s3191_s8 = smov 104   ;;  %s3192_s29 = smov 120  }
  0xa7   : > { %2596 = vmatpush3.msra.mxu1 %v743_v1  ;;  %2585 = vmatpush3.msra.mxu0 %v739_v2  ;;  %v740_v8 = vld [vmem:[%s3561_s7] sm:$0xff]  ;;  %v747_v11 = vld [vmem:[%s3566_s18 + $0x18] sm:$0xff]  ;;  %v746_v12 = vld [vmem:[%s3566_s18 + $0x10] sm:$0xff]  ;;  %s3193_s30 = smov 112   ;;  %s3995_s15 = scalar_lea.vmem [#allocation5], %s3510_s1  ;;  %v1308_v30 = vshrl.u32 %v1307_v28, 7 }
  0xa8   : > { %2597 = vmatprep.subr.mxu1 %v3189_v3  ;;  %2586 = vmatprep.subr.mxu0 %v3189_v3  ;;  %v736_v9 = vld [vmem:[%s3556_s11] sm:$0xff]  ;;  %v745_v13 = vld [vmem:[%s3566_s18 + $0x8] sm:$0xff]  ;;  %v3194_v32 = vmov 0   ;;  %s3999_s21 = sld [smem:[#allocation26_spill]]  ;;  %vm2060_vm6 = vcmask 523264   ;;  %s2198_s24 = sshll.u32 %s3590_s22, 4  ;;  %s3778_s24 = int_to_ptr.vmem [resolvable:$true] %s2198_s24 }
  0xa9   : > { %2598 = vmatpush3.msra.mxu1 %v742_v4  ;;  %2587 = vmatpush3.msra.mxu0 %v738_v5  ;;  %v744_v14 = vld [vmem:[%s3566_s18] sm:$0xff]  ;;  %v1309_v31 = vsub.s32 0, %v1308_v30  ;;  %s3996_s18 = sld [smem:[#allocation45_spill]] }
  0xaa   : > { %2599 = vmatprep.subr.mxu1 %v3189_v3  ;;  %2588 = vmatprep.subr.mxu0 %v3189_v3  ;;  %v1304_v29 = vld [vmem:[%s3995_s15] sm:$0x1]  ;;  %s4001_s16 = sld [smem:[#allocation52_spill]] }
  0xab   : > { %2600 = vmatpush3.msra.mxu1 %v741_v6  ;;  %2589 = vmatpush3.msra.mxu0 %v737_v7  ;;  %v3612_v10 = vld [vmem:[%s3588_s14] sm:$0xff]  ;;  %vm1305_vm4 = vcmp.gt.f32.partialorder %v1304_v29, 0.5  ;;  %v751_v29 = vld [vmem:[%s3529_s27 + $0x18] sm:$0xff] }
  0xac   : > { %2601 = vmatprep.subr.mxu1 %v3189_v3  ;;  %2590 = vmatprep.subr.mxu0 %v3189_v3  ;;  %v1306_v33 = vsel %vm1305_vm4, 1, %v3194_v32 }
  0xad   : > { %2602 = vmatpush3.msra.mxu1 %v740_v8  ;;  %2603 = vmatprep.mubr.msk.f32.mxu1 %vm3190_vm2, %v3189_v3  ;;  %v1310_v34 = vrot.slane %v1306_v33, %v1309_v31 }
  0xae   : > { %2591 = vmatpush3.msra.mxu0 %v736_v9  ;;  %2592 = vmatprep.mubr.msk.f32.mxu0 %vm3190_vm2, %v3189_v3  ;;  %s2520_s7 = sshll.u32 %s3999_s21, 2 }
  0xaf   : > { %2604 = vmatmul.mubr.msk.f32.vlgmr.msra.gmra.mxu1 %vm768_vm1, %v3612_v10  ;;  %2593 = vmatmul.mubr.msk.f32.vlgmr.msra.gmra.mxu0 %vm768_vm1, %v3612_v10  ;;  %vm1311_vm5 = vcmp.eq.s32.totalorder %v1310_v34, 1  ;;  %s3997_s0 = scalar_lea.vmem %s3996_s18, %s3546_s13 }
  0xb0   : > { %2606 = vmatprep.subr.mxu0 %v3189_v3  ;;  %2614 = vmatprep.mubr.msk.f32.mxu0 %vm3190_vm2, %v3189_v3  ;;  %s4002_s3 = smov %s4001_s16 }
  0xb1   : > { %2607 = vmatpush3.msra.mxu0 %v747_v11  ;;  %2622 = vmatprep.subr.mxu1 %v3189_v3 }
  0xb2   : > { %2608 = vmatprep.subr.mxu0 %v3189_v3  ;;  %2624 = vmatprep.mubr.msk.f32.mxu1 %vm3190_vm2, %v3189_v3 }
  0xb3   : > { %2609 = vmatpush3.msra.mxu0 %v746_v12 }
  0xb4   : > { %2610 = vmatprep.subr.mxu0 %v3189_v3 }
  0xb5   : > { %2611 = vmatpush3.msra.mxu0 %v745_v13 }
  0xb6   : > { %2612 = vmatprep.subr.mxu0 %v3189_v3 }
  0xb7   : > { %2613 = vmatpush3.msra.mxu0 %v744_v14 }
  0xb8   : > { %2615 = vmatmul.mubr.msk.f32.vlgmr.msra.gmra.mxu0 %vm768_vm1, %v3612_v10  ;;  %2617 = vmatprep.subr.mxu0 %v3189_v3 }
  0xb9   : > { %2619 = vmatprep.mubr.msk.f32.mxu0 %vm3190_vm2, %v3189_v3 }
 0x16f   : > { %v909_v15 = vpop.f32.mrf.mxu1  ;;  %v838_v16 = vpop.f32.mrf.mxu0 }
 0x170   : > { %995 = vrot.lane.b32.xlu1 %v909_v15, %s3191_s8  ;;  %991 = vrot.lane.b32.xlu0 %v909_v15, %s3192_s29  ;;  %v842_v17 = vmul.f32 0.35355338, %v838_v16 }
 0x171   : > { %2618 = vmatpush3.xpose.msk.msra.mxu0 %vm1007_vm3, %v909_v15  ;;  %v2605_v18 = vpop.f32.mrf.mxu1  ;;  %v2594_v19 = vpop.f32.mrf.mxu0 }
 0x172   : > { %2627 = vmatprep.subr.mxu0 %v3189_v3 }
 0x174   : > { %2620 = vmatmul.mubr.msk.f32.vlgmr.msra.gmra.mxu0 %vm1007_vm3, %v842_v17  ;;  %993 = vrot.lane.b32.xlu0 %v909_v15, %s3193_s30 }
 0x175   : > { %984 = vrot.lane.b32.xlu1 %v842_v17, %s3192_s29  ;;  %2629 = vmatprep.mubr.msk.f32.mxu0 %vm3190_vm2, %v3189_v3 }
 0x178   : > { %986 = vrot.lane.b32.xlu0 %v842_v17, %s3193_s30  ;;  %v3650_v20 = vpop.f32.mrf.mxu0 }
 0x179   : > { %988 = vrot.lane.b32.xlu1 %v842_v17, %s3191_s8 }
 0x17a   : > { %v2616_v21 = vpop.f32.mrf.mxu0 }
 0x1e2   : > { %v996_v22 = vpop.permute.xlu1 %995  ;;  %v992_v23 = vpop.permute.xlu0 %991 }
 0x1e3   : > { %2623 = vmatpush3.xpose.msk.msra.mxu1 %vm1007_vm3, %v992_v23 }
 0x1e4   : > { %2632 = vmatprep.subr.mxu1 %v3189_v3 }
 0x1e6   : > { %v994_v24 = vpop.permute.xlu0 %993 }
 0x1e7   : > { %v985_v25 = vpop.permute.xlu1 %984  ;;  %2628 = vmatpush3.xpose.msk.msra.mxu0 %vm1007_vm3, %v994_v24 }
 0x1e8   : > { %2625 = vmatmul.mubr.msk.f32.vlgmr.msra.gmra.mxu1 %vm1007_vm3, %v985_v25  ;;  %2637 = vmatprep.subr.mxu0 %v3189_v3  ;;  %v749_v25 = vld [vmem:[%s3529_s27 + $0x8] sm:$0xff] }
 0x1e9   : > { %2633 = vmatpush3.xpose.msk.msra.mxu1 %vm1007_vm3, %v996_v22  ;;  %2634 = vmatprep.mubr.msk.f32.mxu1 %vm3190_vm2, %v3189_v3  ;;  %v748_v22 = vld [vmem:[%s3529_s27] sm:$0xff] }
 0x1ea   : > { %v987_v26 = vpop.permute.xlu0 %986  ;;  %2642 = vmatprep.subr.mxu1 %v3189_v3 }
 0x1eb   : > { %v989_v27 = vpop.permute.xlu1 %988  ;;  %2630 = vmatmul.mubr.msk.f32.vlgmr.msra.gmra.mxu0 %vm1007_vm3, %v987_v26  ;;  %v750_v26 = vld [vmem:[%s3529_s27 + $0x10] sm:$0xff] }
 0x1ec   : > { %2635 = vmatmul.mubr.msk.f32.vlgmr.msra.gmra.mxu1 %vm1007_vm3, %v989_v27  ;;  %2638 = vmatpush3.msra.mxu0 %v3650_v20 }
 0x1ed   : > { %2639 = vmatprep.mubr.msk.f32.mxu0 %vm3190_vm2, %v3189_v3  ;;  %2647 = vmatprep.subr.mxu0 %v3189_v3 }
 0x1ee   : > { %2644 = vmatprep.mubr.msk.f32.mxu1 %vm3190_vm2, %v3189_v3 }
 0x234   : > { %v1078_v35 = vpop.f32.mrf.mxu0 }
 0x235   : > { %v1312_v36 = vsel %vm1311_vm5, -1e+09, %v1078_v35 }
 0x236   : > { %v1316_v37 = vsel %vm1007_vm3, %v1312_v36, -inf  ;;  %v2621_v38 = vpop.f32.mrf.mxu0 }
 0x237   : > { %1317 = vmax.xlane.f32.xlu0 %v1316_v37 }
 0x2a8   : > { %v1152_v39 = vpop.f32.mrf.mxu1 }
 0x2a9   : > { %v1313_v40 = vsel %vm1311_vm5, -1e+09, %v1152_v39 }
 0x2aa   : > { %v2626_v41 = vpop.f32.mrf.mxu1  ;;  %v1319_v42 = vsel %vm1007_vm3, %v1313_v40, -inf }
 0x2ab   : > { %1320 = vmax.xlane.f32.xlu1 %v1319_v42  ;;  %v1226_v43 = vpop.f32.mrf.mxu0 }
 0x2ac   : > { %v1314_v44 = vsel %vm1311_vm5, -1e+09, %v1226_v43  ;;  %v1300_v45 = vpop.f32.mrf.mxu1 }
 0x2ad   : > { %v2631_v46 = vpop.f32.mrf.mxu0  ;;  %v1322_v47 = vsel %vm1007_vm3, %v1314_v44, -inf  ;;  %v1315_v48 = vsel %vm1311_vm5, -1e+09, %v1300_v45 }
 0x2ae   : > { %v2636_v49 = vpop.f32.mrf.mxu1  ;;  %1323 = vmax.xlane.f32.xlu0 %v1322_v47  ;;  %v1325_v50 = vsel %vm1007_vm3, %v1315_v48, -inf }
 0x2b2   : > { %1326 = vmax.xlane.f32.xlu0 %v1325_v50 }
 0x2bc   : > { %998 = vrot.lane.b32.xlu1 %v3650_v20, %s3192_s29 }
 0x2c0   : > { %v1318_v51 = vpop.xlane.xlu0 %1317 }
 0x2c1   : > { %v1328_v52 = vsub.f32 %v1312_v36, %v1318_v51 }
 0x2c3   : > { %v1332_v53 = vmul.f32 1.442695, %v1328_v52 }
 0x2c5   : > { %2863 = vpow2.f32 %v1332_v53 }
 0x2d2   : > { %v2864_v54 = vpop.eup %2863 }
 0x2d3   : > { %v1340_v55 = vsel %vm1007_vm3, %v2864_v54, 0.0 }
 0x2e0   : > { %1341 = vadd.xlane.f32.xlu1 %v1340_v55  ;;  %v759_v55 = vld [vmem:[%s3535_s28 + $0x18] sm:$0xff] }
 0x334   : > { %v1321_v56 = vpop.xlane.xlu1 %1320 }
 0x335   : > { %v1329_v57 = vsub.f32 %v1313_v40, %v1321_v56  ;;  %v758_v56 = vld [vmem:[%s3535_s28 + $0x10] sm:$0xff] }
 0x337   : > { %v1334_v58 = vmul.f32 1.442695, %v1329_v57  ;;  %v1324_v59 = vpop.xlane.xlu0 %1323  ;;  %v757_v57 = vld [vmem:[%s3535_s28 + $0x8] sm:$0xff] }
 0x338   : > { %v999_v60 = vpop.permute.xlu1 %998  ;;  %v1330_v61 = vsub.f32 %v1314_v44, %v1324_v59  ;;  %v766_v59 = vld [vmem:[%s3580_s5 + $0x30] sm:$0xff] }
 0x339   : > { %2865 = vpow2.f32 %v1334_v58  ;;  %2643 = vmatpush3.msra.mxu1 %v999_v60  ;;  %v767_v58 = vld [vmem:[%s3580_s5 + $0x38] sm:$0xff]  ;;  %v765_v60 = vld [vmem:[%s3580_s5 + $0x28] sm:$0xff] }
 0x33a   : > { %v1336_v62 = vmul.f32 1.442695, %v1330_v61  ;;  %2652 = vmatprep.subr.mxu1 %v3189_v3  ;;  %v764_v61 = vld [vmem:[%s3580_s5 + $0x20] sm:$0xff] }
 0x33b   : > { %v1327_v63 = vpop.xlane.xlu0 %1326 }
 0x33c   : > { %2867 = vpow2.f32 %v1336_v62  ;;  %v1331_v0 = vsub.f32 %v1315_v48, %v1327_v63  ;;  %v763_v62 = vld [vmem:[%s3580_s5 + $0x18] sm:$0xff]  ;;  %v762_v63 = vld [vmem:[%s3580_s5 + $0x10] sm:$0xff] }
 0x33e   : > { %v1338_v1 = vmul.f32 1.442695, %v1331_v0 }
 0x340   : > { %2869 = vpow2.f32 %v1338_v1 }
 0x346   : > { %v2866_v2 = vpop.eup %2865 }
 0x347   : > { %v1343_v4 = vsel %vm1007_vm3, %v2866_v2, 0.0 }
 0x348   : > { %1344 = vadd.xlane.f32.xlu0 %v1343_v4 }
 0x349   : > { %v2868_v5 = vpop.eup %2867 }
 0x34a   : > { %v1346_v6 = vsel %vm1007_vm3, %v2868_v5, 0.0 }
 0x34b   : > { %1347 = vadd.xlane.f32.xlu1 %v1346_v6 }
 0x34d   : > { %v2870_v7 = vpop.eup %2869 }
 0x34e   : > { %v1349_v8 = vsel %vm1007_vm3, %v2870_v7, 0.0 }
 0x34f   : > { %1350 = vadd.xlane.f32.xlu0 %v1349_v8 }
 0x35c   : > { %1004 = vrot.lane.b32.xlu1 %v3650_v20, %s3191_s8  ;;  %s4003_s8 = sand.u32 1, %s3133_s26  }
 0x35d   : > { %s3787_s29 = scalar_lea.sflag [#allocation12], %s4003_s8 }
 0x365   : > { %1001 = vrot.lane.b32.xlu0 %v3650_v20, %s3193_s30  ;;  %s2995_s30 = scalar_lea.vmem %s3778_s24, 512 }
 0x366   : > { %p2996_p13 = scmp.ne.s32.totalorder %s3778_s24, %s2995_s30 }
 0x368   : > { %p2997_p5 = pnand %p2996_p13, %p3425_p11 }
 0x369   : > { %v1342_v9 = vpop.xlane.xlu1 %1341 }
 0x36a   : > { %2871 = vrcp.f32 %v1342_v9  ;;  %p2998_p6 = pneg %p2997_p5 }
 0x377   : > { %v2872_v11 = vpop.eup %2871 }
 0x378   : > { %v1356_v12 = vmul.f32 %v2872_v11, %v2864_v54  ;;  %v2511_v11 = vld [vmem:[%s3997_s0] ss:$0 sm:$0xff] }
 0x37a   : > { %1360 = vst.msk [vmem:[%s3590_s22] sm:$0xff] %vm1007_vm3, %v1356_v12  ;;  %2640 = vmatmul.mubr.msk.f32.vlgmr.msra.gmra.mxu0 %vm1007_vm3, %v1356_v12 }
 0x37b   : > { %2649 = vmatprep.mubr.msk.f32.mxu0 %vm3190_vm2, %v3189_v3 }
 0x3d1   : > { %v1345_v13 = vpop.xlane.xlu0 %1344 }
 0x3d2   : > { %2873 = vrcp.f32 %v1345_v13  ;;  %v2512_v13 = vld [vmem:[%s716_s12] ss:$0 sm:$0xff]  ;;  %s2521_s12 = sshll.u32 %s3165_s17, 3  ;;  %s3195_s17 = smov [#allocation11]  }
 0x3d3   : > { %s2195_s23 = sadd.s32 %s2521_s12, %s2520_s7 }
 0x3d4   : > { %v1348_v14 = vpop.xlane.xlu1 %1347  ;;  %s2522_s6 = sshll.u32 %s2195_s23, 7 }
 0x3d5   : > { %2875 = vrcp.f32 %v1348_v14  ;;  %s3783_s25 = scalar_lea.hbm %s4001_s16, %s2522_s6 }
 0x3d8   : > { %v1351_v15 = vpop.xlane.xlu0 %1350  ;;  %v1005_v20 = vpop.permute.xlu1 %1004 }
 0x3d9   : > { %2877 = vrcp.f32 %v1351_v15 }
 0x3dc   : > { %v1002_v16 = vpop.permute.xlu0 %1001 }
 0x3dd   : > { %2648 = vmatpush3.msra.mxu0 %v1002_v16  ;;  %v761_v16 = vld [vmem:[%s3580_s5 + $0x8] sm:$0xff] }
 0x3de   : > { %2657 = vmatprep.subr.mxu0 %v3189_v3 }
 0x3df   : > { %v2874_v17 = vpop.eup %2873 }
 0x3e0   : > { %v1357_v18 = vmul.f32 %v2874_v17, %v2866_v2  ;;  %v760_v17 = vld [vmem:[%s3580_s5] sm:$0xff] }
 0x3e2   : > { %v2876_v19 = vpop.eup %2875  ;;  %1361 = vst.msk [vmem:[%s3590_s22 + $0x8] sm:$0xff] %vm1007_vm3, %v1357_v18  ;;  %2645 = vmatmul.mubr.msk.f32.vlgmr.msra.gmra.mxu1 %vm1007_vm3, %v1357_v18 }
 0x3e3   : > { %2653 = vmatpush3.msra.mxu1 %v1005_v20  ;;  %v1358_v21 = vmul.f32 %v2876_v19, %v2868_v5  ;;  %2654 = vmatprep.mubr.msk.f32.mxu1 %vm3190_vm2, %v3189_v3 }
 0x3e4   : > { %2662 = vmatprep.subr.mxu1 %v3189_v3 }
 0x3e5   : > { %1362 = vst.msk [vmem:[%s3590_s22 + $0x10] sm:$0xff] %vm1007_vm3, %v1358_v21  ;;  %2650 = vmatmul.mubr.msk.f32.vlgmr.msra.gmra.mxu0 %vm1007_vm3, %v1358_v21 }
 0x3e6   : > { %v2878_v23 = vpop.eup %2877  ;;  %2658 = vmatpush3.msra.mxu0 %v748_v22  ;;  %2659 = vmatprep.mubr.msk.f32.mxu0 %vm3190_vm2, %v3189_v3 }
 0x3e7   : > { %v1359_v24 = vmul.f32 %v2878_v23, %v2870_v7  ;;  %2667 = vmatprep.subr.mxu0 %v3189_v3 }
 0x3e9   : > { %1363 = vst.msk [vmem:[%s3590_s22 + $0x18] sm:$0xff] %vm1007_vm3, %v1359_v24  ;;  %2655 = vmatmul.mubr.msk.f32.vlgmr.msra.gmra.mxu1 %vm1007_vm3, %v1359_v24  ;;  %s2999_s22 = sshll.u32 %s3195_s17, 4  ;;  %s3000_s22 = int_to_ptr.vmem [resolvable:$false] %s2999_s22 }
 0x3ea   : > { %2664 = vmatprep.mubr.msk.f32.mxu1 %vm3190_vm2, %v3189_v3  ;;  %2663 = vmatpush3.msra.mxu1 %v749_v25  ;;  %s3001_s15 = scalar_lea.vmem %s3000_s22, 1024  ;;  %p3002_p2 = scmp.lt.s32.totalorder %s3778_s24, %s3000_s22 }
 0x3eb   : > { %2672 = vmatprep.subr.mxu1 %v3189_v3  ;;  %p3003_p9 = scmp.lt.s32.totalorder %s3001_s15, %s2995_s30 }
 0x3ed   : > { %p3004_p10 = por %p3003_p9, %p3002_p2 }
 0x3ef   : > { %p3005_p4 = pnand %p3004_p10, %p2998_p6 }
 0x43a   : > { %v1433_v27 = vpop.f32.mrf.mxu0 }
 0x43b   : > { %2660 = vmatmul.mubr.msk.f32.vlgmr.msra.gmra.mxu0 %vm1007_vm3, %v1433_v27 }
 0x43c   : > { %v2641_v28 = vpop.f32.mrf.mxu0  ;;  %2668 = vmatpush3.msra.mxu0 %v750_v26  ;;  %2669 = vmatprep.mubr.msk.f32.mxu0 %vm3190_vm2, %v3189_v3 }
 0x43d   : > { %2677 = vmatprep.subr.mxu0 %v3189_v3 }
 0x4a2   : > { %v1506_v30 = vpop.f32.mrf.mxu1 }
 0x4a3   : > { %2665 = vmatmul.mubr.msk.f32.vlgmr.msra.gmra.mxu1 %vm1007_vm3, %v1506_v30 }
 0x4a4   : > { %v2646_v31 = vpop.f32.mrf.mxu1  ;;  %2673 = vmatpush3.msra.mxu1 %v751_v29  ;;  %2674 = vmatprep.mubr.msk.f32.mxu1 %vm3190_vm2, %v3189_v3 }
 0x4a5   : > { %v1579_v32 = vpop.f32.mrf.mxu0  ;;  %2688 = vmatprep.subr.mxu1 %v3189_v3 }
 0x4a6   : > { %2670 = vmatmul.mubr.msk.f32.vlgmr.msra.gmra.mxu0 %vm1007_vm3, %v1579_v32 }
 0x4a7   : > { %v2651_v33 = vpop.f32.mrf.mxu0  ;;  %2685 = vmatprep.mubr.msk.f32.mxu0 %vm3190_vm2, %v3189_v3  ;;  %2678 = vmatpush3.msra.mxu0 %v759_v55 }
 0x4a8   : > { %2679 = vmatprep.subr.mxu0 %v3189_v3 }
 0x4a9   : > { %v1652_v34 = vpop.f32.mrf.mxu1  ;;  %2680 = vmatpush3.msra.mxu0 %v758_v56 }
 0x4aa   : > { %2675 = vmatmul.mubr.msk.f32.vlgmr.msra.gmra.mxu1 %vm1007_vm3, %v1652_v34  ;;  %2681 = vmatprep.subr.mxu0 %v3189_v3 }
 0x4ab   : > { %v2656_v35 = vpop.f32.mrf.mxu1  ;;  %2704 = vmatprep.mubr.msk.f32.mxu1 %vm3190_vm2, %v3189_v3  ;;  %2682 = vmatpush3.msra.mxu0 %v757_v57 }
 0x4ac   : > { %2683 = vmatprep.subr.mxu0 %v3189_v3  ;;  %2689 = vmatpush3.msra.mxu1 %v767_v58 }
 0x4ad   : > { %2690 = vmatprep.subr.mxu1 %v3189_v3 }
 0x4ae   : > { %2691 = vmatpush3.msra.mxu1 %v766_v59 }
 0x4af   : > { %2692 = vmatprep.subr.mxu1 %v3189_v3 }
 0x4b0   : > { %2693 = vmatpush3.msra.mxu1 %v765_v60 }
 0x4b1   : > { %2694 = vmatprep.subr.mxu1 %v3189_v3 }
 0x4b2   : > { %2695 = vmatpush3.msra.mxu1 %v764_v61 }
 0x4b3   : > { %2696 = vmatprep.subr.mxu1 %v3189_v3 }
 0x4b4   : > { %2697 = vmatpush3.msra.mxu1 %v763_v62 }
 0x4b5   : > { %2698 = vmatprep.subr.mxu1 %v3189_v3 }
 0x4b6   : > { %2699 = vmatpush3.msra.mxu1 %v762_v63 }
 0x4b7   : > { %2700 = vmatprep.subr.mxu1 %v3189_v3 }
 0x4b8   : > { %2701 = vmatpush3.msra.mxu1 %v761_v16 }
 0x4b9   : > { %2702 = vmatprep.subr.mxu1 %v3189_v3 }
 0x4ba   : > { %2703 = vmatpush3.msra.mxu1 %v760_v17 }
 0x4fb   : > { %v1725_v36 = vpop.f32.mrf.mxu0 }
 0x4fc   : > { %v1948_v42 = vsel %vm768_vm1, %v1725_v36, 0.0 }
 0x4fd   : > { %v2661_v37 = vpop.f32.mrf.mxu0 }
 0x563   : > { %v1798_v38 = vpop.f32.mrf.mxu1 }
 0x564   : > { %v1949_v39 = vsel %vm768_vm1, %v1798_v38, 0.0 }
 0x565   : > { %v2666_v40 = vpop.f32.mrf.mxu1  ;;  %v1950_v44 = vadd.f32 %v1949_v39, %v1948_v42 }
 0x566   : > { %v1871_v41 = vpop.f32.mrf.mxu0 }
 0x567   : > { %v1951_v43 = vsel %vm768_vm1, %v1871_v41, 0.0 }
 0x568   : > { %v2671_v45 = vpop.f32.mrf.mxu0  ;;  %v1952_v46 = vadd.f32 %v1951_v43, %v1950_v44 }
 0x56a   : > { %v1944_v47 = vpop.f32.mrf.mxu1 }
 0x56b   : > { %v1953_v48 = vsel %vm768_vm1, %v1944_v47, 0.0 }
 0x56c   : > { %v1954_v49 = vadd.f32 %v1953_v48, %v1952_v46  ;;  %v2676_v50 = vpop.f32.mrf.mxu1 }
 0x56e   : > { %v1955_v51 = vadd.f32 %v1954_v49, %v3612_v10  ;;  %v756_v10 = vld [vmem:[%s3535_s28] sm:$0xff] }
 0x56f   : > { %2684 = vmatpush3.msra.mxu0 %v756_v10 }
 0x570   : > { %v1956_v52 = vsel %vm768_vm1, %v1955_v51, 0.0  ;;  %v1961_v53 = vmul.f32 %v1955_v51, %v1955_v51 }
 0x571   : > { %1957 = vadd.xlane.f32.xlu1 %v1956_v52 }
 0x572   : > { %v1962_v54 = vsel %vm768_vm1, %v1961_v53, 0.0 }
 0x573   : > { %1963 = vadd.xlane.f32.xlu0 %v1962_v54 }
 0x5fa   : > { %v1958_v0 = vpop.xlane.xlu1 %1957 }
 0x5fb   : > { %v1960_v1 = vmul.f32 0.03125, %v1958_v0 }
 0x5fc   : > { %v1964_v2 = vpop.xlane.xlu0 %1963 }
 0x5fd   : > { %v1966_v4 = vmul.f32 %v1960_v1, %v1960_v1  ;;  %v1965_v5 = vmul.f32 0.03125, %v1964_v2  ;;  %v1968_v8 = vsub.f32 %v1955_v51, %v1960_v1 }
 0x5ff   : > { %v1967_v6 = vsub.f32 %v1965_v5, %v1966_v4 }
 0x601   : > { %v1969_v7 = vadd.f32 1e-05, %v1967_v6 }
 0x603   : > { %2879 = vrsqrt.f32 %v1969_v7 }
 0x610   : > { %v2880_v9 = vpop.eup %2879 }
 0x611   : > { %v1971_v12 = vmul.f32 %v2880_v9, %v1968_v8 }
 0x613   : > { %v1978_v14 = vmul.f32 %v2511_v11, %v1971_v12 }
 0x615   : > { %v1985_v15 = vadd.f32 %v2512_v13, %v1978_v14 }
 0x617   : > { %2686 = vmatmul.mubr.msk.f32.vlgmr.msra.gmra.mxu0 %vm768_vm1, %v1985_v15 }
 0x6d7   : > { %v2055_v18 = vpop.f32.mrf.mxu0 }
 0x6d8   : > { %v2059_v19 = vmax.f32 %v2055_v18, 0.0 }
 0x6d9   : > { %v2687_v20 = vpop.f32.mrf.mxu0 }
 0x6da   : > { %2705 = vmatmul.mubr.msk.f32.vlgmr.msra.gmra.mxu1 %vm2060_vm6, %v2059_v19 }
 0x79a   : > { %v2130_v21 = vpop.f32.mrf.mxu1 }
 0x79b   : > { %v2131_v22 = vadd.f32 %v2130_v21, %v1985_v15 }
 0x79c   : > { %v2706_v23 = vpop.f32.mrf.mxu1 }
 0x79d   : > { %v2134_v24 = vsel %vm768_vm1, %v2131_v22, 0.0  ;;  %v2138_v25 = vmul.f32 %v2131_v22, %v2131_v22 }
 0x79e   : > { %2135 = vadd.xlane.f32.xlu0 %v2134_v24 }
 0x79f   : > { %v2139_v26 = vsel %vm768_vm1, %v2138_v25, 0.0 }
 0x7a0   : > { %2140 = vadd.xlane.f32.xlu1 %v2139_v26 }
 0x7a1   : > { %3008 = shalt.err (!%p3005_p4)
}
 0x7a2   : > { %s3009_s19 = scalar_lea.hbm %s3783_s25, 512  ;;  %s3013_s0 = scalar_lea.hbm %s4002_s3, 2048 }
 0x7a3   : > { %p3010_p12 = scmp.ne.s32.totalorder %s3783_s25, %s3009_s19  ;;  %p3014_p7 = scmp.lt.s32.totalorder %s3783_s25, %s4002_s3 }
 0x7a4   : > { %p3015_p3 = scmp.lt.s32.totalorder %s3013_s0, %s3009_s19 }
 0x7a5   : > { %p3011_p1 = pnand %p3010_p12, %p3425_p11 }
 0x7a6   : > { %p3016_p13 = por %p3015_p3, %p3014_p7 }
 0x7a7   : > { %p3012_p0 = pneg %p3011_p1 }
 0x7a9   : > { %p3017_p5 = pnand %p3016_p13, %p3012_p0 }
 0x7ab   : > { %3020 = shalt.err (!%p3017_p5)
}
 0x7ac   : > { %s3196_s4 = smov 128   ;;  %s3197_s7 = smov 8   ;;  %v2515_v35 = vld [vmem:[%s724_s2] ss:$0 sm:$0xff] }
 0x7ad   : > { %2716 = dma.vmem_to_hbm [thread:$0]  (%p3425_p11), %s3778_s24, 512, %s3783_s25, %s3787_s29, %s3196_s4, %s3196_s4, %s3197_s7  }
 0x7ae   : > { %v2516_v37 = vld [vmem:[%s727_s10] ss:$0 sm:$0xff]  ;;  %s2519_s16 = sshll.u32 %s3999_s21, 7  ;;  %s2183_s25 = sshll.u32 %s3588_s14, 4  ;;  %s2184_s25 = int_to_ptr.vmem [resolvable:$true] %s2183_s25 }
 0x7af   : > { %s4007_s30 = sld [smem:[#allocation51_spill]]  ;;  %s2165_s15 = scalar_lea.sflag [#allocation4], %s3510_s1 }
 0x7b0   : > { %s3021_s19 = scalar_lea.vmem %s2184_s25, 128  ;;  %s3198_s2 = smov [#allocation10]  }
 0x7b1   : > { %p3022_p11 = scmp.ne.s32.totalorder %s2184_s25, %s3021_s19  ;;  %s3025_s13 = sshll.u32 %s3198_s2, 4  ;;  %s3026_s13 = int_to_ptr.vmem [resolvable:$false] %s3025_s13 }
 0x7b2   : > { %s3027_s10 = scalar_lea.vmem %s3026_s13, 256  ;;  %p3028_p9 = scmp.lt.s32.totalorder %s2184_s25, %s3026_s13 }
 0x7b3   : > { %p3023_p6 = pnand %p3022_p11, %p3407_p8  ;;  %p3029_p10 = scmp.lt.s32.totalorder %s3027_s10, %s3021_s19 }
 0x7b5   : > { %s4008_s22 = smov %s4007_s30  ;;  %s2181_s17 = scalar_lea.hbm %s4007_s30, %s2519_s16 }
 0x7b6   : > { %p3024_p2 = pneg %p3023_p6  ;;  %p3030_p4 = por %p3029_p10, %p3028_p9 }
 0x7b8   : > { %p3031_p12 = pnand %p3030_p4, %p3024_p2 }
 0x827   : > { %v2136_v3 = vpop.xlane.xlu0 %2135 }
 0x828   : > { %v2137_v27 = vmul.f32 0.03125, %v2136_v3 }
 0x829   : > { %v2141_v28 = vpop.xlane.xlu1 %2140 }
 0x82a   : > { %v2143_v29 = vmul.f32 %v2137_v27, %v2137_v27  ;;  %v2142_v30 = vmul.f32 0.03125, %v2141_v28  ;;  %v2145_v33 = vsub.f32 %v2131_v22, %v2137_v27 }
 0x82c   : > { %v2144_v31 = vsub.f32 %v2142_v30, %v2143_v29 }
 0x82e   : > { %v2146_v32 = vadd.f32 1e-05, %v2144_v31 }
 0x830   : > { %2881 = vrsqrt.f32 %v2146_v32 }
 0x83d   : > { %v2882_v34 = vpop.eup %2881 }
 0x83e   : > { %v2148_v36 = vmul.f32 %v2882_v34, %v2145_v33 }
 0x840   : > { %v2155_v38 = vmul.f32 %v2515_v35, %v2148_v36 }
 0x842   : > { %v2162_v39 = vadd.f32 %v2516_v37, %v2155_v38 }
 0x844   : > { %2163 = vst.msk [vmem:[%s3588_s14] sm:$0xff] %vm768_vm1, %v2162_v39 }
 0x845   : > { %3034 = shalt.err (!%p3031_p12)
}
 0x846   : > { %s3035_s21 = scalar_lea.hbm %s2181_s17, 128  ;;  %s3039_s20 = scalar_lea.hbm %s4008_s22, 256 }
 0x847   : > { %p3036_p1 = scmp.ne.s32.totalorder %s2181_s17, %s3035_s21  ;;  %p3040_p3 = scmp.lt.s32.totalorder %s2181_s17, %s4008_s22 }
 0x848   : > { %p3041_p13 = scmp.lt.s32.totalorder %s3039_s20, %s3035_s21 }
 0x849   : > { %p3037_p0 = pnand %p3036_p1, %p3407_p8 }
 0x84a   : > { %p3042_p5 = por %p3041_p13, %p3040_p3 }
 0x84b   : > { %p3038_p7 = pneg %p3037_p0 }
 0x84d   : > { %p3043_p11 = pnand %p3042_p5, %p3038_p7 }
 0x84f   : > { %3046 = shalt.err (!%p3043_p11)
}
 0x850   : > { %2715 = dma.vmem_to_hbm [thread:$0]  (%p3407_p8), %s2184_s25, 128, %s2181_s17, %s2165_s15  }
 0x851 PF: > { %s4009_s27 = sld [smem:[#allocation29_spill]] }
 0x852   : > { %s4010_s28 = sld [smem:[#allocation23_spill]] }
 0x853   : > { %s4011_s4 = sld [smem:[#allocation35_spill]] }
 0x857   : > { %p2740_p6 = scmp.ge.s32.totalorder %s4009_s27, 2 }
 0x858   : > { %s2213_s7 = sand.u32 1, %s4010_s28  }
 0x859   : > { %p4012_p2 = scmp.ne.s32.totalorder %s4011_s4, 0  ;;  %s2214_s23 = scalar_lea.sflag [#allocation4], %s2213_s7 }
 0x85b   : > { %p2733_p9 = pnand %p2740_p6, %p4012_p2 }
 0x85d   : > { %p2734_p10 = pneg %p2733_p9 }
 0x85f   : > { %3120 = dma.done.wait (%p2734_p10), %s2214_s23, 128  }
 0x860   : > { %3122 = vsyncadd (%p2734_p10), %s2214_s23, 4294967168  ;;  %s4013_s6 = sld [smem:[#allocation19_spill]] }
 0x861   : > { %s4014_s9 = sld [smem:[#allocation38_spill]] }
 0x866   : > { %s2222_s11 = sand.u32 1, %s4013_s6  }
 0x867   : > { %p4015_p4 = scmp.ne.s32.totalorder %s4014_s9, 0  ;;  %s2223_s12 = scalar_lea.sflag [#allocation12], %s2222_s11 }
 0x869   : > { %p2736_p12 = pnand %p2740_p6, %p4015_p4 }
 0x86b   : > { %p2737_p1 = pneg %p2736_p12 }
 0x86d   : > { %3124 = dma.done.wait (%p2737_p1), %s2223_s12, 512  }
 0x86e   : > { %3126 = vsyncadd (%p2737_p1), %s2223_s12, 4294966784  ;;  %s39_s21 = sadd.s32 1, %s4009_s27   ;;  %s4017_s5 = sld [smem:[#allocation20_spill]] }
 0x86f   : > { %p3848_p8 = scmp.ge.s32.totalorder %s39_s21, 6   ;;  %s4018_s27 = sld [smem:[#allocation36_spill]] }
 0x870   : > { %s4019_s28 = sld [smem:[#allocation21_spill]]  ;;  %s4029_s25 = smov %s3133_s26 }
 0x871   : > { %s4020_s29 = sld [smem:[#allocation22_spill]] }
 0x872   : > { %s4021_s30 = sld [smem:[#allocation32_spill]] }
 0x873   : > { %s4022_s14 = sld [smem:[#allocation24_spill]] }
 0x874   : > { %s4023_s15 = sld [smem:[#allocation25_spill]]  ;;  %s4030_s26 = smov %s4017_s5 }
 0x875   : > { %s4024_s16 = sld [smem:[#allocation33_spill]]  ;;  %38 = sbr.rel (!%p3848_p8) target bundleno = 31 (0x1f), region = 195 }
 0x876   : > { %s4025_s17 = sld [smem:[#allocation27_spill]] }
 0x877   : > { %s4026_s18 = sld [smem:[#allocation28_spill]] }
 0x878   : > { %s4027_s19 = sld [smem:[#allocation30_spill]] }
 0x879   : > { %s4028_s20 = sld [smem:[#allocation31_spill]] }
 0x87a   :  { %2228 = vsyncpa [#allocation3], 1 }
 0x87b   :  { %2230 = vsyncpa [#allocation3 + $0x1], 1 }
 0x87c   :  { %2231 = vsyncpa [#allocation6], 1 }
 0x87d   :  { %2233 = vsyncpa [#allocation6 + $0x1], 1 }
 0x87e   :  { %2234 = vsyncpa [#allocation9], 1 }
 0x87f   :  { %2236 = vsyncpa [#allocation9 + $0x1], 1 }
 0x880   :  { %2237 = vsyncpa [#allocation4], 1 }
 0x881   :  { %2239 = vsyncpa [#allocation4 + $0x1], 1 }
 0x882   :  { %2240 = vsyncpa [#allocation12], 1 }
 0x883   :  { %2242 = vsyncpa [#allocation12 + $0x1], 1 }

</bundles_post_ra>
